<compile_context>
chip_gen: v5e
topology: v5e:2x2
jax: 0.10.0
libtpu: 0.0.40
codegen_flags: <defaults>
</compile_context>

<pallas_src>
import functools

import jax
import jax.numpy as jnp
from jax.experimental import pallas as pl
from jax.experimental.pallas import tpu as pltpu


_VMEM_LIMIT = 32 * 1024 * 1024   # safe scoped limit on v5e/v6e (128 MiB) and v7x (64 MiB)


def _pick_tile(n, target):
    """Largest candidate tile <= target that evenly divides n (fallback: n)."""
    if n <= target:
        return n
    for cand in (target, 1024, 512, 256, 128, 64, 32, 16, 8):
        if cand <= target and n % cand == 0:
            return cand
    return n


# ---------------------------------------------------------------------------
# Tiled bias-free linear:  y = x @ w   (x: (M, K), w pre-transposed (K, N))
# ---------------------------------------------------------------------------
def _linear_kernel(x_ref, w_ref, o_ref):
    # One (TM, K) x (K, N) MXU matmul per grid step.  The weight BlockSpec has a
    # constant index_map, so it is DMA'd once and stays VMEM-resident.
    o_ref[...] = jnp.dot(x_ref[...], w_ref[...],
                         preferred_element_type=jnp.float32).astype(o_ref.dtype)


def linear_pallas(x2d, w, *, tm_target=256):
    M, K = x2d.shape
    Kw, N = w.shape
    assert K == Kw
    tm = _pick_tile(M, tm_target)
    grid_m = M // tm
    return pl.pallas_call(
        _linear_kernel,
        out_shape=jax.ShapeDtypeStruct((M, N), x2d.dtype),
        grid=(grid_m,),
        in_specs=[
            pl.BlockSpec((tm, K), lambda i: (i, 0)),   # streamed per M-tile
            pl.BlockSpec((K, N), lambda i: (0, 0)),    # resident weights
        ],
        out_specs=pl.BlockSpec((tm, N), lambda i: (i, 0)),
        compiler_params=pltpu.CompilerParams(
            dimension_semantics=("parallel",),
            vmem_limit_bytes=_VMEM_LIMIT),
    )(x2d, w)


# ---------------------------------------------------------------------------
# a[b, c] = mean over spatial of (h + w + c)   (inputs (B, HW, C) -> (B, C))
# ---------------------------------------------------------------------------
def _mean_kernel(h_ref, w_ref, c_ref, o_ref, *, inv_hw):
    s = pl.program_id(1)

    @pl.when(s == 0)
    def _():
        o_ref[...] = jnp.zeros_like(o_ref)

    t = h_ref[...] + w_ref[...] + c_ref[...]            # (1, TS, C)
    o_ref[...] += jnp.sum(t, axis=1, keepdims=True)     # accumulate (1, 1, C)

    @pl.when(s == pl.num_programs(1) - 1)
    def _():
        o_ref[...] = o_ref[...] * inv_hw


def spatial_mean_pallas(h3, w3, c3, *, ts_target=512):
    B, HW, C = h3.shape
    ts = _pick_tile(HW, ts_target)
    blk = pl.BlockSpec((1, ts, C), lambda b, s: (b, s, 0))
    out = pl.pallas_call(
        functools.partial(_mean_kernel, inv_hw=1.0 / HW),
        out_shape=jax.ShapeDtypeStruct((B, 1, C), jnp.float32),
        grid=(B, HW // ts),
        in_specs=[blk, blk, blk],
        out_specs=pl.BlockSpec((1, 1, C), lambda b, s: (b, 0, 0)),
        compiler_params=pltpu.CompilerParams(
            dimension_semantics=("parallel", "arbitrary"),
            vmem_limit_bytes=_VMEM_LIMIT),
    )(h3, w3, c3)
    return out.reshape(B, C)


# ---------------------------------------------------------------------------
# reweight Mlp: fc1 + bias -> LeakyReLU(0.3) -> fc2 + bias  (Dropout p=0 elided)
# ---------------------------------------------------------------------------
def _reweight_kernel(a_ref, w1_ref, b1_ref, w2_ref, b2_ref, o_ref):
    h = jnp.dot(a_ref[...], w1_ref[...],
                preferred_element_type=jnp.float32) + b1_ref[...]
    h = jnp.where(h >= 0, h, 0.3 * h)                   # LeakyReLU(0.3)
    y = jnp.dot(h.astype(w2_ref.dtype), w2_ref[...],
                preferred_element_type=jnp.float32) + b2_ref[...]
    o_ref[...] = y.astype(o_ref.dtype)


def reweight_pallas(a, w1, b1, w2, b2):
    B, _ = a.shape
    N = w2.shape[1]
    # Tiny (B x C) problem: whole arrays fit trivially in VMEM.
    return pl.pallas_call(
        _reweight_kernel,
        out_shape=jax.ShapeDtypeStruct((B, N), jnp.float32),
        compiler_params=pltpu.CompilerParams(vmem_limit_bytes=_VMEM_LIMIT),
    )(a, w1, b1, w2, b2)


# ---------------------------------------------------------------------------
# softmax over the 3 branch logits + weighted combine
#   out = h * a0 + w * a1 + c * a2,  a = softmax_k(ahat[b, k, c])
# ---------------------------------------------------------------------------
def _combine_kernel(h_ref, w_ref, c_ref, a_ref, o_ref):
    a0 = a_ref[:, 0:1, :].astype(jnp.float32)           # (1, 1, C)
    a1 = a_ref[:, 1:2, :].astype(jnp.float32)
    a2 = a_ref[:, 2:3, :].astype(jnp.float32)
    m = jnp.maximum(jnp.maximum(a0, a1), a2)
    e0 = jnp.exp(a0 - m)
    e1 = jnp.exp(a1 - m)
    e2 = jnp.exp(a2 - m)
    inv = 1.0 / (e0 + e1 + e2)
    o_ref[...] = (h_ref[...] * (e0 * inv)
                  + w_ref[...] * (e1 * inv)
                  + c_ref[...] * (e2 * inv)).astype(o_ref.dtype)


def combine_pallas(h3, w3, c3, ahat, *, ts_target=512):
    B, HW, C = h3.shape
    ts = _pick_tile(HW, ts_target)
    blk = pl.BlockSpec((1, ts, C), lambda b, s: (b, s, 0))
    a_spec = pl.BlockSpec((1, 3, C), lambda b, s: (b, 0, 0))
    return pl.pallas_call(
        _combine_kernel,
        out_shape=jax.ShapeDtypeStruct((B, HW, C), h3.dtype),
        grid=(B, HW // ts),
        in_specs=[blk, blk, blk, a_spec],
        out_specs=blk,
        compiler_params=pltpu.CompilerParams(
            dimension_semantics=("parallel", "parallel"),
            vmem_limit_bytes=_VMEM_LIMIT),
    )(h3, w3, c3, ahat)


# ---------------------------------------------------------------------------
# Full WeightedPermuteMLP forward
# ---------------------------------------------------------------------------
def weighted_permute_mlp_pallas(x, params, *, segment_dim):
    B, H, W, C = x.shape
    S = C // segment_dim
    d2 = H * S
    d3 = W * S

    # h branch: token-mix along H in segment-permuted layout
    xh = (x.reshape(B, H, W, segment_dim, S)
            .transpose(0, 3, 2, 1, 4)                      # (B, seg, W, H, S)
            .reshape(B * segment_dim * W, d2))
    h = linear_pallas(xh, params["wh"])
    h = (h.reshape(B, segment_dim, W, H, S)
           .transpose(0, 3, 2, 1, 4)                       # (B, H, W, seg, S)
           .reshape(B, H * W, C))

    # w branch: token-mix along W
    xw = (x.reshape(B, H, W, segment_dim, S)
            .transpose(0, 1, 3, 2, 4)                      # (B, H, seg, W, S)
            .reshape(B * H * segment_dim, d3))
    w = linear_pallas(xw, params["ww"])
    w = (w.reshape(B, H, segment_dim, W, S)
           .transpose(0, 1, 3, 2, 4)                       # (B, H, W, seg, S)
           .reshape(B, H * W, C))

    # c branch: channel mix
    c = linear_pallas(x.reshape(B * H * W, C), params["wc"]).reshape(B, H * W, C)

    # reweighting: spatial mean -> Mlp -> (softmax fused into combine kernel)
    a = spatial_mean_pallas(h, w, c)                                   # (B, C)
    ahat = reweight_pallas(a, params["rw1"], params["rb1"],
                           params["rw2"], params["rb2"])               # (B, 3C)
    ahat = ahat.reshape(B, C, 3).transpose(0, 2, 1)                    # (B, 3, C)

    out = combine_pallas(h, w, c, ahat)                                # (B, HW, C)
    # TODO(synk): proj_drop (Dropout p=0.1) is the identity in eval/inference
    # mode; training-mode dropout would need pltpu.prng_seed/prng_random_bits.
    return out.reshape(B, H, W, C)


# ---------------------------------------------------------------------------
# Pure-JAX reference (mirrors the PyTorch forward, weights stored [in, out])
# ---------------------------------------------------------------------------
def weighted_permute_mlp_reference(x, params, *, segment_dim):
    B, H, W, C = x.shape
    S = C // segment_dim

    xh = (x.reshape(B, H, W, segment_dim, S)
            .transpose(0, 3, 2, 1, 4).reshape(B, segment_dim, W, H * S))
    h = xh @ params["wh"]
    h = (h.reshape(B, segment_dim, W, H, S)
           .transpose(0, 3, 2, 1, 4).reshape(B, H, W, C))

    xw = (x.reshape(B, H, W, segment_dim, S)
            .transpose(0, 1, 3, 2, 4).reshape(B, H, segment_dim, W * S))
    w = xw @ params["ww"]
    w = (w.reshape(B, H, segment_dim, W, S)
           .transpose(0, 1, 3, 2, 4).reshape(B, H, W, C))

    c = x @ params["wc"]

    a = (h + w + c).transpose(0, 3, 1, 2).reshape(B, C, H * W).mean(axis=2)
    a = a @ params["rw1"] + params["rb1"]
    a = jnp.where(a >= 0, a, 0.3 * a)
    a = a @ params["rw2"] + params["rb2"]
    a = a.reshape(B, C, 3).transpose(2, 0, 1)              # (3, B, C)
    a = jax.nn.softmax(a, axis=0)[:, :, None, None, :]     # (3, B, 1, 1, C)
    return h * a[0] + w * a[1] + c * a[2]


if __name__ == "__main__":
    key = jax.random.PRNGKey(0)
    ks = jax.random.split(key, 8)

    B, H, W, C = 2, 16, 16, 128
    segment_dim = 8
    S = C // segment_dim
    dim1, dim2, dim3 = C, H * S, W * S                     # 128, 256, 256
    hidden = dim1 // 2

    def uinit(k, shape, fan_in):
        bound = 1.0 / float(fan_in) ** 0.5
        return jax.random.uniform(k, shape, minval=-bound, maxval=bound,
                                  dtype=jnp.float32)

    x = jax.random.normal(ks[0], (B, H, W, C), dtype=jnp.float32)
    params = {
        # mlp_c / mlp_h / mlp_w: bias-free (qkv_bias=False), stored as W.T [in, out]
        "wc": uinit(ks[1], (dim1, dim1), dim1),
        "wh": uinit(ks[2], (dim2, dim2), dim2),
        "ww": uinit(ks[3], (dim3, dim3), dim3),
        # reweight Mlp: dim1 -> dim1//2 -> 3*dim1 (with biases)
        "rw1": uinit(ks[4], (dim1, hidden), dim1),
        "rb1": uinit(ks[5], (1, hidden), dim1),
        "rw2": uinit(ks[6], (hidden, 3 * dim1), hidden),
        "rb2": uinit(ks[7], (1, 3 * dim1), hidden),
    }

    fwd = jax.jit(functools.partial(weighted_permute_mlp_pallas,
                                    segment_dim=segment_dim))
    out = jax.block_until_ready(fwd(x, params))

    ref = weighted_permute_mlp_reference(x, params, segment_dim=segment_dim)
    assert out.shape == (B, H, W, C)
    assert jnp.allclose(out, ref, atol=1e-3, rtol=1e-3), (
        "mismatch vs reference, max abs err = "
        f"{float(jnp.max(jnp.abs(out - ref)))}")

    print("KERNEL_OK")
</pallas_src>

<mosaic_0001>
module attributes {stable_mosaic.version = 11 : i64} {
  func.func @_linear_kernel(%arg0: i32, %arg1: memref<256x128xf32, #tpu.memory_space<vmem>>, %arg2: memref<128x128xf32, #tpu.memory_space<vmem>>, %arg3: memref<256x128xf32, #tpu.memory_space<vmem>>) attributes {dimension_semantics = [#tpu.dimension_semantics<parallel>], iteration_bounds = array<i64: 2>, scalar_prefetch = 0 : i64, scratch_operands = 0 : i64, tpu.core_type = #tpu.core_type<tc>, window_params = [{transform_indices = @transform_0, window_bounds = array<i64: 256, 128>}, {pipeline_mode = #tpu.pipeline_mode<synchronous>, transform_indices = @transform_1, window_bounds = array<i64: 128, 128>}, {transform_indices = @transform_2, window_bounds = array<i64: 256, 128>}]} {
    %c0 = arith.constant 0 : index
    %c0_0 = arith.constant 0 : index
    %0 = vector.load %arg1[%c0, %c0_0] : memref<256x128xf32, #tpu.memory_space<vmem>>, vector<256x128xf32>
    %c0_1 = arith.constant 0 : index
    %c0_2 = arith.constant 0 : index
    %1 = vector.load %arg2[%c0_1, %c0_2] : memref<128x128xf32, #tpu.memory_space<vmem>>, vector<128x128xf32>
    %cst = arith.constant dense<0.000000e+00> : vector<256x128xf32>
    %2 = tpu.matmul %0, %1, %cst {dimension_numbers = #tpu.dot_dimension_numbers<[1], [0], [0], [1], [0, 0, 1, 1], [], []>} : vector<256x128xf32>, vector<128x128xf32>, vector<256x128xf32> -> vector<256x128xf32>
    %c0_3 = arith.constant 0 : index
    %c0_4 = arith.constant 0 : index
    %3 = vector.load %arg3[%c0_3, %c0_4] : memref<256x128xf32, #tpu.memory_space<vmem>>, vector<256x128xf32>
    tpu.vector_store %arg3[%c0_3, %c0_4], %2 {strides = array<i32>} : memref<256x128xf32, #tpu.memory_space<vmem>>, vector<256x128xf32>,
    return
  }
  func.func @transform_0(%arg0: i32) -> (i32, i32) {
    %c0_i32 = arith.constant 0 : i32
    %c0_i32_0 = arith.constant 0 : i32
    return %arg0, %c0_i32 : i32, i32
  }
  func.func @transform_1(%arg0: i32) -> (i32, i32) {
    %c0_i32 = arith.constant 0 : i32
    %c0_i32_0 = arith.constant 0 : i32
    %c0_i32_1 = arith.constant 0 : i32
    return %c0_i32, %c0_i32_0 : i32, i32
  }
  func.func @transform_2(%arg0: i32) -> (i32, i32) {
    %c0_i32 = arith.constant 0 : i32
    %c0_i32_0 = arith.constant 0 : i32
    return %arg0, %c0_i32 : i32, i32
  }
}

module attributes {stable_mosaic.version = 11 : i64} {
  func.func @_linear_kernel(%arg0: i32, %arg1: memref<256x256xf32, #tpu.memory_space<vmem>>, %arg2: memref<256x256xf32, #tpu.memory_space<vmem>>, %arg3: memref<256x256xf32, #tpu.memory_space<vmem>>) attributes {dimension_semantics = [#tpu.dimension_semantics<parallel>], iteration_bounds = array<i64: 1>, scalar_prefetch = 0 : i64, scratch_operands = 0 : i64, tpu.core_type = #tpu.core_type<tc>, window_params = [{transform_indices = @transform_0, window_bounds = array<i64: 256, 256>}, {pipeline_mode = #tpu.pipeline_mode<synchronous>, transform_indices = @transform_1, window_bounds = array<i64: 256, 256>}, {transform_indices = @transform_2, window_bounds = array<i64: 256, 256>}]} {
    %c0 = arith.constant 0 : index
    %c0_0 = arith.constant 0 : index
    %0 = vector.load %arg1[%c0, %c0_0] : memref<256x256xf32, #tpu.memory_space<vmem>>, vector<256x256xf32>
    %c0_1 = arith.constant 0 : index
    %c0_2 = arith.constant 0 : index
    %1 = vector.load %arg2[%c0_1, %c0_2] : memref<256x256xf32, #tpu.memory_space<vmem>>, vector<256x256xf32>
    %cst = arith.constant dense<0.000000e+00> : vector<256x256xf32>
    %2 = tpu.matmul %0, %1, %cst {dimension_numbers = #tpu.dot_dimension_numbers<[1], [0], [0], [1], [0, 0, 1, 1], [], []>} : vector<256x256xf32>, vector<256x256xf32>, vector<256x256xf32> -> vector<256x256xf32>
    %c0_3 = arith.constant 0 : index
    %c0_4 = arith.constant 0 : index
    %3 = vector.load %arg3[%c0_3, %c0_4] : memref<256x256xf32, #tpu.memory_space<vmem>>, vector<256x256xf32>
    tpu.vector_store %arg3[%c0_3, %c0_4], %2 {strides = array<i32>} : memref<256x256xf32, #tpu.memory_space<vmem>>, vector<256x256xf32>,
    return
  }
  func.func @transform_0(%arg0: i32) -> (i32, i32) {
    %c0_i32 = arith.constant 0 : i32
    %c0_i32_0 = arith.constant 0 : i32
    return %arg0, %c0_i32 : i32, i32
  }
  func.func @transform_1(%arg0: i32) -> (i32, i32) {
    %c0_i32 = arith.constant 0 : i32
    %c0_i32_0 = arith.constant 0 : i32
    %c0_i32_1 = arith.constant 0 : i32
    return %c0_i32, %c0_i32_0 : i32, i32
  }
  func.func @transform_2(%arg0: i32) -> (i32, i32) {
    %c0_i32 = arith.constant 0 : i32
    %c0_i32_0 = arith.constant 0 : i32
    return %arg0, %c0_i32 : i32, i32
  }
}

module attributes {stable_mosaic.version = 11 : i64} {
  func.func @_mean_kernel(%arg0: i32, %arg1: i32, %arg2: memref<1x256x128xf32, #tpu.memory_space<vmem>>, %arg3: memref<1x256x128xf32, #tpu.memory_space<vmem>>, %arg4: memref<1x256x128xf32, #tpu.memory_space<vmem>>, %arg5: memref<1x1x128xf32, #tpu.memory_space<vmem>>) attributes {dimension_semantics = [#tpu.dimension_semantics<parallel>, #tpu.dimension_semantics<arbitrary>], iteration_bounds = array<i64: 2, 1>, scalar_prefetch = 0 : i64, scratch_operands = 0 : i64, tpu.core_type = #tpu.core_type<tc>, window_params = [{transform_indices = @transform_0, window_bounds = array<i64: 1, 256, 128>}, {transform_indices = @transform_1, window_bounds = array<i64: 1, 256, 128>}, {transform_indices = @transform_2, window_bounds = array<i64: 1, 256, 128>}, {transform_indices = @transform_3, window_bounds = array<i64: 1, 1, 128>}]} {
    %c0_i32 = arith.constant 0 : i32
    %0 = arith.cmpi eq, %arg1, %c0_i32 : i32
    %1 = arith.extui %0 : i1 to i32
    %c0_i32_0 = arith.constant 0 : i32
    %2 = arith.cmpi ne, %1, %c0_i32_0 : i32
    scf.if %2 {
      %cst_17 = arith.constant 0.000000e+00 : f32
      %16 = vector.broadcast %cst_17 : f32 to vector<1x1x128xf32>
      %c0_18 = arith.constant 0 : index
      %c0_19 = arith.constant 0 : index
      %c0_20 = arith.constant 0 : index
      %17 = vector.load %arg5[%c0_18, %c0_19, %c0_20] : memref<1x1x128xf32, #tpu.memory_space<vmem>>, vector<1x1x128xf32>
      tpu.vector_store %arg5[%c0_18, %c0_19, %c0_20], %16 {strides = array<i32>} : memref<1x1x128xf32, #tpu.memory_space<vmem>>, vector<1x1x128xf32>,
    } else {
    }
    %c0 = arith.constant 0 : index
    %c0_1 = arith.constant 0 : index
    %c0_2 = arith.constant 0 : index
    %3 = vector.load %arg2[%c0, %c0_1, %c0_2] : memref<1x256x128xf32, #tpu.memory_space<vmem>>, vector<1x256x128xf32>
    %c0_3 = arith.constant 0 : index
    %c0_4 = arith.constant 0 : index
    %c0_5 = arith.constant 0 : index
    %4 = vector.load %arg3[%c0_3, %c0_4, %c0_5] : memref<1x256x128xf32, #tpu.memory_space<vmem>>, vector<1x256x128xf32>
    %5 = arith.addf %3, %4 : vector<1x256x128xf32>
    %c0_6 = arith.constant 0 : index
    %c0_7 = arith.constant 0 : index
    %c0_8 = arith.constant 0 : index
    %6 = vector.load %arg4[%c0_6, %c0_7, %c0_8] : memref<1x256x128xf32, #tpu.memory_space<vmem>>, vector<1x256x128xf32>
    %7 = arith.addf %5, %6 : vector<1x256x128xf32>
    %c0_9 = arith.constant 0 : index
    %c0_10 = arith.constant 0 : index
    %c0_11 = arith.constant 0 : index
    %8 = vector.load %arg5[%c0_9, %c0_10, %c0_11] : memref<1x1x128xf32, #tpu.memory_space<vmem>>, vector<1x1x128xf32>
    %cst = arith.constant dense<0.000000e+00> : vector<1x128xf32>
    %9 = vector.multi_reduction <add>, %7, %cst [1] : vector<1x256x128xf32> to vector<1x128xf32>
    %10 = vector.shape_cast %9 : vector<1x128xf32> to vector<1x1x128xf32>
    %11 = arith.addf %8, %10 : vector<1x1x128xf32>
    %c0_12 = arith.constant 0 : index
    %c0_13 = arith.constant 0 : index
    %c0_14 = arith.constant 0 : index
    %12 = vector.load %arg5[%c0_12, %c0_13, %c0_14] : memref<1x1x128xf32, #tpu.memory_space<vmem>>, vector<1x1x128xf32>
    tpu.vector_store %arg5[%c0_12, %c0_13, %c0_14], %11 {strides = array<i32>} : memref<1x1x128xf32, #tpu.memory_space<vmem>>, vector<1x1x128xf32>,
    %c0_i32_15 = arith.constant 0 : i32
    %13 = arith.cmpi eq, %arg1, %c0_i32_15 : i32
    %14 = arith.extui %13 : i1 to i32
    %c0_i32_16 = arith.constant 0 : i32
    %15 = arith.cmpi ne, %14, %c0_i32_16 : i32
    scf.if %15 {
      %c0_17 = arith.constant 0 : index
      %c0_18 = arith.constant 0 : index
      %c0_19 = arith.constant 0 : index
      %16 = vector.load %arg5[%c0_17, %c0_18, %c0_19] : memref<1x1x128xf32, #tpu.memory_space<vmem>>, vector<1x1x128xf32>
      %cst_20 = arith.constant 3.906250e-03 : f32
      %17 = vector.broadcast %cst_20 : f32 to vector<1x1x128xf32>
      %18 = arith.mulf %16, %17 : vector<1x1x128xf32>
      %c0_21 = arith.constant 0 : index
      %c0_22 = arith.constant 0 : index
      %c0_23 = arith.constant 0 : index
      %19 = vector.load %arg5[%c0_21, %c0_22, %c0_23] : memref<1x1x128xf32, #tpu.memory_space<vmem>>, vector<1x1x128xf32>
      tpu.vector_store %arg5[%c0_21, %c0_22, %c0_23], %18 {strides = array<i32>} : memref<1x1x128xf32, #tpu.memory_space<vmem>>, vector<1x1x128xf32>,
    } else {
    }
    return
  }
  func.func @transform_0(%arg0: i32, %arg1: i32) -> (i32, i32, i32) {
    %c0_i32 = arith.constant 0 : i32
    %c0_i32_0 = arith.constant 0 : i32
    return %arg0, %arg1, %c0_i32 : i32, i32, i32
  }
  func.func @transform_1(%arg0: i32, %arg1: i32) -> (i32, i32, i32) {
    %c0_i32 = arith.constant 0 : i32
    %c0_i32_0 = arith.constant 0 : i32
    return %arg0, %arg1, %c0_i32 : i32, i32, i32
  }
  func.func @transform_2(%arg0: i32, %arg1: i32) -> (i32, i32, i32) {
    %c0_i32 = arith.constant 0 : i32
    %c0_i32_0 = arith.constant 0 : i32
    return %arg0, %arg1, %c0_i32 : i32, i32, i32
  }
  func.func @transform_3(%arg0: i32, %arg1: i32) -> (i32, i32, i32) {
    %c0_i32 = arith.constant 0 : i32
    %c0_i32_0 = arith.constant 0 : i32
    %c0_i32_1 = arith.constant 0 : i32
    return %arg0, %c0_i32, %c0_i32_0 : i32, i32, i32
  }
}

module attributes {stable_mosaic.version = 11 : i64} {
  func.func @_reweight_kernel(%arg0: memref<2x128xf32, #tpu.memory_space<vmem>>, %arg1: memref<128x64xf32, #tpu.memory_space<vmem>>, %arg2: memref<1x64xf32, #tpu.memory_space<vmem>>, %arg3: memref<64x384xf32, #tpu.memory_space<vmem>>, %arg4: memref<1x384xf32, #tpu.memory_space<vmem>>, %arg5: memref<2x384xf32, #tpu.memory_space<vmem>>) attributes {dimension_semantics = [], scalar_prefetch = 0 : i64, scratch_operands = 0 : i64, tpu.core_type = #tpu.core_type<tc>} {
    %c0 = arith.constant 0 : index
    %c0_0 = arith.constant 0 : index
    %0 = vector.load %arg0[%c0, %c0_0] : memref<2x128xf32, #tpu.memory_space<vmem>>, vector<2x128xf32>
    %c0_1 = arith.constant 0 : index
    %c0_2 = arith.constant 0 : index
    %1 = vector.load %arg1[%c0_1, %c0_2] : memref<128x64xf32, #tpu.memory_space<vmem>>, vector<128x64xf32>
    %cst = arith.constant dense<0.000000e+00> : vector<2x64xf32>
    %2 = tpu.matmul %0, %1, %cst {dimension_numbers = #tpu.dot_dimension_numbers<[1], [0], [0], [1], [0, 0, 1, 1], [], []>} : vector<2x128xf32>, vector<128x64xf32>, vector<2x64xf32> -> vector<2x64xf32>
    %c0_3 = arith.constant 0 : index
    %c0_4 = arith.constant 0 : index
    %3 = vector.load %arg2[%c0_3, %c0_4] : memref<1x64xf32, #tpu.memory_space<vmem>>, vector<1x64xf32>
    %4 = vector.broadcast %3 : vector<1x64xf32> to vector<2x64xf32>
    %5 = arith.addf %2, %4 : vector<2x64xf32>
    %cst_5 = arith.constant 0.000000e+00 : f32
    %6 = vector.broadcast %cst_5 : f32 to vector<2x64xf32>
    %7 = arith.cmpf oge, %5, %6 : vector<2x64xf32>
    %cst_6 = arith.constant 3.000000e-01 : f32
    %8 = vector.broadcast %cst_6 : f32 to vector<2x64xf32>
    %9 = arith.mulf %8, %5 : vector<2x64xf32>
    %10 = arith.select %7, %5, %9 : vector<2x64xi1>, vector<2x64xf32>
    %c0_7 = arith.constant 0 : index
    %c0_8 = arith.constant 0 : index
    %11 = vector.load %arg3[%c0_7, %c0_8] : memref<64x384xf32, #tpu.memory_space<vmem>>, vector<64x384xf32>
    %cst_9 = arith.constant dense<0.000000e+00> : vector<2x384xf32>
    %12 = tpu.matmul %10, %11, %cst_9 {dimension_numbers = #tpu.dot_dimension_numbers<[1], [0], [0], [1], [0, 0, 1, 1], [], []>} : vector<2x64xf32>, vector<64x384xf32>, vector<2x384xf32> -> vector<2x384xf32>
    %c0_10 = arith.constant 0 : index
    %c0_11 = arith.constant 0 : index
    %13 = vector.load %arg4[%c0_10, %c0_11] : memref<1x384xf32, #tpu.memory_space<vmem>>, vector<1x384xf32>
    %14 = vector.broadcast %13 : vector<1x384xf32> to vector<2x384xf32>
    %15 = arith.addf %12, %14 : vector<2x384xf32>
    %c0_12 = arith.constant 0 : index
    %c0_13 = arith.constant 0 : index
    %16 = vector.load %arg5[%c0_12, %c0_13] : memref<2x384xf32, #tpu.memory_space<vmem>>, vector<2x384xf32>
    tpu.vector_store %arg5[%c0_12, %c0_13], %15 {strides = array<i32>} : memref<2x384xf32, #tpu.memory_space<vmem>>, vector<2x384xf32>,
    return
  }
}

module attributes {stable_mosaic.version = 11 : i64} {
  func.func @_combine_kernel(%arg0: i32, %arg1: i32, %arg2: memref<1x256x128xf32, #tpu.memory_space<vmem>>, %arg3: memref<1x256x128xf32, #tpu.memory_space<vmem>>, %arg4: memref<1x256x128xf32, #tpu.memory_space<vmem>>, %arg5: memref<1x3x128xf32, #tpu.memory_space<vmem>>, %arg6: memref<1x256x128xf32, #tpu.memory_space<vmem>>) attributes {dimension_semantics = [#tpu.dimension_semantics<parallel>, #tpu.dimension_semantics<parallel>], iteration_bounds = array<i64: 2, 1>, scalar_prefetch = 0 : i64, scratch_operands = 0 : i64, tpu.core_type = #tpu.core_type<tc>, window_params = [{transform_indices = @transform_0, window_bounds = array<i64: 1, 256, 128>}, {transform_indices = @transform_1, window_bounds = array<i64: 1, 256, 128>}, {transform_indices = @transform_2, window_bounds = array<i64: 1, 256, 128>}, {transform_indices = @transform_3, window_bounds = array<i64: 1, 3, 128>}, {transform_indices = @transform_4, window_bounds = array<i64: 1, 256, 128>}]} {
    %c0 = arith.constant 0 : index
    %c0_0 = arith.constant 0 : index
    %c0_1 = arith.constant 0 : index
    %0 = vector.load %arg5[%c0, %c0_0, %c0_1] : memref<1x3x128xf32, #tpu.memory_space<vmem>>, vector<1x1x128xf32>
    %c0_2 = arith.constant 0 : index
    %c1 = arith.constant 1 : index
    %c0_3 = arith.constant 0 : index
    %1 = vector.load %arg5[%c0_2, %c1, %c0_3] : memref<1x3x128xf32, #tpu.memory_space<vmem>>, vector<1x1x128xf32>
    %c0_4 = arith.constant 0 : index
    %c2 = arith.constant 2 : index
    %c0_5 = arith.constant 0 : index
    %2 = vector.load %arg5[%c0_4, %c2, %c0_5] : memref<1x3x128xf32, #tpu.memory_space<vmem>>, vector<1x1x128xf32>
    %3 = arith.maximumf %0, %1 : vector<1x1x128xf32>
    %4 = arith.maximumf %3, %2 : vector<1x1x128xf32>
    %5 = arith.subf %0, %4 : vector<1x1x128xf32>
    %6 = math.exp %5 : vector<1x1x128xf32>
    %7 = arith.subf %1, %4 : vector<1x1x128xf32>
    %8 = math.exp %7 : vector<1x1x128xf32>
    %9 = arith.subf %2, %4 : vector<1x1x128xf32>
    %10 = math.exp %9 : vector<1x1x128xf32>
    %11 = arith.addf %6, %8 : vector<1x1x128xf32>
    %12 = arith.addf %11, %10 : vector<1x1x128xf32>
    %cst = arith.constant 1.000000e+00 : f32
    %13 = vector.broadcast %cst : f32 to vector<1x1x128xf32>
    %14 = arith.divf %13, %12 : vector<1x1x128xf32>
    %c0_6 = arith.constant 0 : index
    %c0_7 = arith.constant 0 : index
    %c0_8 = arith.constant 0 : index
    %15 = vector.load %arg2[%c0_6, %c0_7, %c0_8] : memref<1x256x128xf32, #tpu.memory_space<vmem>>, vector<1x256x128xf32>
    %16 = arith.mulf %6, %14 : vector<1x1x128xf32>
    %17 = vector.broadcast %16 : vector<1x1x128xf32> to vector<1x256x128xf32>
    %18 = arith.mulf %15, %17 : vector<1x256x128xf32>
    %c0_9 = arith.constant 0 : index
    %c0_10 = arith.constant 0 : index
    %c0_11 = arith.constant 0 : index
    %19 = vector.load %arg3[%c0_9, %c0_10, %c0_11] : memref<1x256x128xf32, #tpu.memory_space<vmem>>, vector<1x256x128xf32>
    %20 = arith.mulf %8, %14 : vector<1x1x128xf32>
    %21 = vector.broadcast %20 : vector<1x1x128xf32> to vector<1x256x128xf32>
    %22 = arith.mulf %19, %21 : vector<1x256x128xf32>
    %23 = arith.addf %18, %22 : vector<1x256x128xf32>
    %c0_12 = arith.constant 0 : index
    %c0_13 = arith.constant 0 : index
    %c0_14 = arith.constant 0 : index
    %24 = vector.load %arg4[%c0_12, %c0_13, %c0_14] : memref<1x256x128xf32, #tpu.memory_space<vmem>>, vector<1x256x128xf32>
    %25 = arith.mulf %10, %14 : vector<1x1x128xf32>
    %26 = vector.broadcast %25 : vector<1x1x128xf32> to vector<1x256x128xf32>
    %27 = arith.mulf %24, %26 : vector<1x256x128xf32>
    %28 = arith.addf %23, %27 : vector<1x256x128xf32>
    %c0_15 = arith.constant 0 : index
    %c0_16 = arith.constant 0 : index
    %c0_17 = arith.constant 0 : index
    %29 = vector.load %arg6[%c0_15, %c0_16, %c0_17] : memref<1x256x128xf32, #tpu.memory_space<vmem>>, vector<1x256x128xf32>
    tpu.vector_store %arg6[%c0_15, %c0_16, %c0_17], %28 {strides = array<i32>} : memref<1x256x128xf32, #tpu.memory_space<vmem>>, vector<1x256x128xf32>,
    return
  }
  func.func @transform_0(%arg0: i32, %arg1: i32) -> (i32, i32, i32) {
    %c0_i32 = arith.constant 0 : i32
    %c0_i32_0 = arith.constant 0 : i32
    return %arg0, %arg1, %c0_i32 : i32, i32, i32
  }
  func.func @transform_1(%arg0: i32, %arg1: i32) -> (i32, i32, i32) {
    %c0_i32 = arith.constant 0 : i32
    %c0_i32_0 = arith.constant 0 : i32
    return %arg0, %arg1, %c0_i32 : i32, i32, i32
  }
  func.func @transform_2(%arg0: i32, %arg1: i32) -> (i32, i32, i32) {
    %c0_i32 = arith.constant 0 : i32
    %c0_i32_0 = arith.constant 0 : i32
    return %arg0, %arg1, %c0_i32 : i32, i32, i32
  }
  func.func @transform_3(%arg0: i32, %arg1: i32) -> (i32, i32, i32) {
    %c0_i32 = arith.constant 0 : i32
    %c0_i32_0 = arith.constant 0 : i32
    %c0_i32_1 = arith.constant 0 : i32
    return %arg0, %c0_i32, %c0_i32_0 : i32, i32, i32
  }
  func.func @transform_4(%arg0: i32, %arg1: i32) -> (i32, i32, i32) {
    %c0_i32 = arith.constant 0 : i32
    %c0_i32_0 = arith.constant 0 : i32
    return %arg0, %arg1, %c0_i32 : i32, i32, i32
  }
}

</mosaic_0001>

<bundles_post_ra>
// kernel: weighted_permute_mlp_pallas.8
= control target key start
LH: loop header
LB: loop body
LE: loop exit
PB: predicated region body
PF: predicated region fallthrough
CT: control target
= control target key end

     0   :  { %7 = vsyncpa [#allocation3], 0  ;;  %s869_s0 = inlined_call_operand.hbm [shape: f32[512,128], index: 0, kind: input, shape index: {}]   ;;  %s870_s1 = inlined_call_operand.hbm [shape: f32[128,128], index: 1, kind: input, shape index: {}]   ;;  %s871_s2 = inlined_call_operand.vmem [shape: f32[512,128], index: 2, kind: output, shape index: {}]  }
   0x1   :  { %9 = vsyncpa [#allocation3 + $0x1], 0 }
   0x2   :  { %10 = vsyncpa [#allocation5], 0  ;;  %s689_s9 = smov 0   ;;  %s691_s10 = smov 0  }
   0x3   :  { %s693_s11 = smov 0   ;;  %s695_s12 = smov 0  }
   0x4 LB: > { %s455_s13 = sadd.s32 4294967295, %s669_s12   ;;  %p36_p0 = scmp.ne.s32.totalorder %s661_s10, %s657_s9  ;;  %s669_s12 = sphi %s695_s12, %s879_s12   ;;  %s665_s11 = sphi %s693_s11, %s878_s11   ;;  %s661_s10 = sphi %s691_s10, %s877_s10   ;;  %s657_s9 = sphi %s689_s9, %s876_s9  }
   0x5   : > { %p711_p1 = scmp.eq.s32.totalorder %s455_s13, 0  ;;  %p457_p2 = scmp.ge.s32.totalorder %s669_s12, 1 }
   0x6   : > { %p94_p3 = scmp.lt.s32.totalorder %s669_s12, 3  ;;  %s105_s18 = sshll.u32 %s870_s1, 4  ;;  %s106_s18 = int_to_ptr.hbm [resolvable:$true] %s105_s18 }
   0x7   : > { %p719_p4 = por %p711_p1, %p36_p0  ;;  %s671_s20 = smov [#allocation4]  }
   0x8   : > { %p726_p5 = pnand %p457_p2, %p94_p3  ;;  %s107_s21 = sshll.u32 %s671_s20, 4  ;;  %s108_s21 = int_to_ptr.vmem [resolvable:$true] %s107_s21 }
   0x9   : > { %s735_s22 = sadd.s32 1, %s669_s12   ;;  %s672_s23 = smov 128  }
   0xa   : > { %p525_p6 = pneg %p726_p5  ;;  %s673_s24 = smov 8  }
   0xb   : > { %s20_s25 = ssub.s32 %s669_s12, %s735_s22  ;;  %s23_s26 = sadd.s32 1, %s665_s11 }
   0xc   : > { %p526_p7 = pnand %p525_p6, %p711_p1  ;;  %p21_p8 = scmp.eq.s32.totalorder %s20_s25, 0 }
   0xd   : > { %p30_p9 = scmp.ne.s32.totalorder %s665_s11, %s661_s10  ;;  %p31_p10 = scmp.eq.s32.totalorder %s669_s12, 0 }
   0xe   : > { %528 = dma.hbm_to_vmem [thread:$0]  (!%p526_p7), %s106_s18, 2048, %s108_s21, [#allocation5], %s672_s23, %s672_s23, %s673_s24  }
   0xf   : > { %p534_p11 = scmp.lt.s32.totalorder %s669_s12, 2  ;;  %p32_p12 = por %p31_p10, %p30_p9 }
  0x10   : > { %s748_s27 = scalar_select %p21_p8, %s665_s11, %s23_s26  }
  0x11   : > { %s121_s28 = sand.u32 1, %s665_s11   ;;  %s470_s30 = sshll.u32 %s669_s12, 8 }
  0x12   : > { %s460_s29 = sshll.u32 %s121_s28, 8  ;;  %s130_s5 = scalar_lea.hbm %s869_s0, %s470_s30 }
  0x13   : > { %s125_s6 = scalar_lea.vmem [#allocation2], %s460_s29  ;;  %s131_s8 = sshll.u32 %s130_s5, 4  ;;  %s132_s8 = int_to_ptr.hbm [resolvable:$true] %s131_s8 }
  0x14   : > { %s133_s7 = sshll.u32 %s125_s6, 4  ;;  %p755_p13 = pnand %p534_p11, %p32_p12  ;;  %s134_s7 = int_to_ptr.vmem [resolvable:$true] %s133_s7 }
  0x15   : > { %s122_s16 = scalar_lea.sflag [#allocation3], %s121_s28  ;;  %s601_s17 = sshra.s32 %s132_s8, 4  ;;  %s602_s17 = int_to_ptr.hbm [resolvable:$true] %s601_s17 }
  0x16   : > { %s603_s18 = scalar_lea.hbm %s602_s17, 256  ;;  %p605_p2 = pneg %p755_p13 }
  0x17   : > { %p604_p0 = scmp.ne.s32.totalorder %s602_s17, %s603_s18  ;;  %s608_s25 = scalar_lea.hbm %s869_s0, 512 }
  0x18   : > { %p609_p7 = scmp.lt.s32.totalorder %s602_s17, %s869_s0  ;;  %p610_p8 = scmp.lt.s32.totalorder %s608_s25, %s603_s18 }
  0x19   : > { %p606_p3 = pnand %p605_p2, %p604_p0 }
  0x1a   : > { %p611_p9 = por %p610_p8, %p609_p7 }
  0x1b   : > { %p607_p6 = pneg %p606_p3 }
  0x1d   : > { %p612_p10 = pnand %p611_p9, %p607_p6 }
  0x1f   : > { %615 = shalt.err (!%p612_p10)
}
  0x20   : > { %532 = dma.hbm_to_vmem [thread:$0]  (!%p755_p13), %s132_s8, 4096, %s134_s7, %s122_s16, %s672_s23, %s672_s23, %s673_s24  }
  0x21   : > { %145 = sbr.rel (%p726_p5) target bundleno = 263 (0x107), region = 28  ;;  %s147_s28 = sand.u32 (!%p726_p5), 1, %s661_s10  }
  0x22   : > { %s464_s30 = sshll.u32 (!%p726_p5), %s147_s28, 8  ;;  %s148_s3 = scalar_lea.sflag (!%p726_p5), [#allocation3], %s147_s28 }
  0x23   : > { %s775_s4 = scalar_lea.vmem (!%p726_p5), [#allocation2], %s464_s30 }
  0x26   : > { %648 = dma.done.wait (%p719_p4), %s148_s3, 4096  }
  0x27   : > { %650 = vsyncadd (%p719_p4), %s148_s3, 4294963200 }
  0x28   : > { %652 = dma.done.wait (%p711_p1), [#allocation5], 2048  }
  0x29   : > { %654 = vsyncadd (%p711_p1), [#allocation5], 4294965248  ;;  %v232_v0 = vld [vmem:[#allocation4 + $0x78] sm:$0xff]  ;;  %v231_v1 = vld [vmem:[#allocation4 + $0x70] sm:$0xff]  ;;  %s466_s14 = sshll.u32 %s455_s13, 5 }
  0x2a   : > { %472 = vmatpush.msra.mxu2 %v232_v0  ;;  %473 = vmatpush.msra.mxu3 %v232_v0  ;;  %v230_v2 = vld [vmem:[#allocation4 + $0x68] sm:$0xff]  ;;  %v229_v3 = vld [vmem:[#allocation4 + $0x60] sm:$0xff]  ;;  %v228_v4 = vld [vmem:[#allocation4 + $0x58] sm:$0xff]  ;;  %p180_p1 = scmp.lt.s32.totalorder %s466_s14, 63 }
  0x2b   : > { %233 = vmatpush.msra.mxu0 %v232_v0  ;;  %471 = vmatpush.msra.mxu1 %v232_v0  ;;  %v227_v5 = vld [vmem:[#allocation4 + $0x50] sm:$0xff]  ;;  %v226_v6 = vld [vmem:[#allocation4 + $0x48] sm:$0xff]  ;;  %v225_v7 = vld [vmem:[#allocation4 + $0x40] sm:$0xff] }
  0x2c   : > { %475 = vmatpush.msra.mxu2 %v231_v1  ;;  %476 = vmatpush.msra.mxu3 %v231_v1  ;;  %v224_v8 = vld [vmem:[#allocation4 + $0x38] sm:$0xff]  ;;  %v223_v9 = vld [vmem:[#allocation4 + $0x30] sm:$0xff]  ;;  %v222_v10 = vld [vmem:[#allocation4 + $0x28] sm:$0xff]  ;;  %s881_s14 = smov (!%p180_p1, %s466_s14), 63 }
  0x2d   : > { %234 = vmatpush.msra.mxu0 %v231_v1  ;;  %474 = vmatpush.msra.mxu1 %v231_v1  ;;  %v221_v11 = vld [vmem:[#allocation4 + $0x20] sm:$0xff]  ;;  %v220_v12 = vld [vmem:[#allocation4 + $0x18] sm:$0xff]  ;;  %v219_v13 = vld [vmem:[#allocation4 + $0x10] sm:$0xff]  ;;  %s467_s15 = sshll.u32 %s881_s14, 3 }
  0x2e   : > { %478 = vmatpush.msra.mxu2 %v230_v2  ;;  %479 = vmatpush.msra.mxu3 %v230_v2  ;;  %v218_v14 = vld [vmem:[#allocation4 + $0x8] sm:$0xff]  ;;  %v217_v15 = vld [vmem:[#allocation4] sm:$0xff]  ;;  %v203_v24 = vld [vmem:[%s775_s4 + $0x90] sm:$0xff]  ;;  %s822_s24 = scalar_lea.vmem %s871_s2, %s467_s15 }
  0x2f   : > { %235 = vmatpush.msra.mxu0 %v230_v2  ;;  %477 = vmatpush.msra.mxu1 %v230_v2  ;;  %v201_v16 = vld [vmem:[%s775_s4 + $0x80] sm:$0xff]  ;;  %v202_v20 = vld [vmem:[%s775_s4 + $0x88] sm:$0xff]  ;;  %v211_v25 = vld [vmem:[%s775_s4 + $0xd0] sm:$0xff] }
  0x30   : > { %481 = vmatpush.msra.mxu2 %v229_v3  ;;  %482 = vmatpush.msra.mxu3 %v229_v3  ;;  %v209_v17 = vld [vmem:[%s775_s4 + $0xc0] sm:$0xff]  ;;  %v210_v21 = vld [vmem:[%s775_s4 + $0xc8] sm:$0xff]  ;;  %v187_v26 = vld [vmem:[%s775_s4 + $0x10] sm:$0xff] }
  0x31   : > { %236 = vmatpush.msra.mxu0 %v229_v3  ;;  %480 = vmatpush.msra.mxu1 %v229_v3  ;;  %v185_v18 = vld [vmem:[%s775_s4] sm:$0xff]  ;;  %v186_v22 = vld [vmem:[%s775_s4 + $0x8] sm:$0xff]  ;;  %v195_v27 = vld [vmem:[%s775_s4 + $0x50] sm:$0xff] }
  0x32   : > { %484 = vmatpush.msra.mxu2 %v228_v4  ;;  %485 = vmatpush.msra.mxu3 %v228_v4  ;;  %v193_v19 = vld [vmem:[%s775_s4 + $0x40] sm:$0xff]  ;;  %v194_v23 = vld [vmem:[%s775_s4 + $0x48] sm:$0xff]  ;;  %v204_v28 = vld [vmem:[%s775_s4 + $0x98] sm:$0xff] }
  0x33   : > { %237 = vmatpush.msra.mxu0 %v228_v4  ;;  %483 = vmatpush.msra.mxu1 %v228_v4  ;;  %v212_v29 = vld [vmem:[%s775_s4 + $0xd8] sm:$0xff]  ;;  %v205_v32 = vld [vmem:[%s775_s4 + $0xa0] sm:$0xff]  ;;  %v206_v36 = vld [vmem:[%s775_s4 + $0xa8] sm:$0xff] }
  0x34   : > { %487 = vmatpush.msra.mxu2 %v227_v5  ;;  %488 = vmatpush.msra.mxu3 %v227_v5  ;;  %v188_v30 = vld [vmem:[%s775_s4 + $0x18] sm:$0xff]  ;;  %v213_v33 = vld [vmem:[%s775_s4 + $0xe0] sm:$0xff]  ;;  %v214_v37 = vld [vmem:[%s775_s4 + $0xe8] sm:$0xff] }
  0x35   : > { %238 = vmatpush.msra.mxu0 %v227_v5  ;;  %486 = vmatpush.msra.mxu1 %v227_v5  ;;  %v196_v31 = vld [vmem:[%s775_s4 + $0x58] sm:$0xff]  ;;  %v189_v34 = vld [vmem:[%s775_s4 + $0x20] sm:$0xff]  ;;  %v190_v38 = vld [vmem:[%s775_s4 + $0x28] sm:$0xff] }
  0x36   : > { %490 = vmatpush.msra.mxu2 %v226_v6  ;;  %491 = vmatpush.msra.mxu3 %v226_v6  ;;  %v197_v35 = vld [vmem:[%s775_s4 + $0x60] sm:$0xff]  ;;  %v198_v39 = vld [vmem:[%s775_s4 + $0x68] sm:$0xff]  ;;  %v207_v40 = vld [vmem:[%s775_s4 + $0xb0] sm:$0xff] }
  0x37   : > { %239 = vmatpush.msra.mxu0 %v226_v6  ;;  %489 = vmatpush.msra.mxu1 %v226_v6  ;;  %v215_v41 = vld [vmem:[%s775_s4 + $0xf0] sm:$0xff]  ;;  %v208_v44 = vld [vmem:[%s775_s4 + $0xb8] sm:$0xff] }
  0x38   : > { %493 = vmatpush.msra.mxu2 %v225_v7  ;;  %494 = vmatpush.msra.mxu3 %v225_v7  ;;  %v191_v42 = vld [vmem:[%s775_s4 + $0x30] sm:$0xff]  ;;  %v216_v45 = vld [vmem:[%s775_s4 + $0xf8] sm:$0xff] }
  0x39   : > { %240 = vmatpush.msra.mxu0 %v225_v7  ;;  %492 = vmatpush.msra.mxu1 %v225_v7  ;;  %v199_v43 = vld [vmem:[%s775_s4 + $0x70] sm:$0xff]  ;;  %v192_v46 = vld [vmem:[%s775_s4 + $0x38] sm:$0xff] }
  0x3a   : > { %496 = vmatpush.msra.mxu2 %v224_v8  ;;  %497 = vmatpush.msra.mxu3 %v224_v8  ;;  %v200_v47 = vld [vmem:[%s775_s4 + $0x78] sm:$0xff] }
  0x3b   : > { %241 = vmatpush.msra.mxu0 %v224_v8  ;;  %495 = vmatpush.msra.mxu1 %v224_v8 }
  0x3c   : > { %499 = vmatpush.msra.mxu2 %v223_v9  ;;  %500 = vmatpush.msra.mxu3 %v223_v9 }
  0x3d   : > { %242 = vmatpush.msra.mxu0 %v223_v9  ;;  %498 = vmatpush.msra.mxu1 %v223_v9 }
  0x3e   : > { %502 = vmatpush.msra.mxu2 %v222_v10  ;;  %503 = vmatpush.msra.mxu3 %v222_v10 }
  0x3f   : > { %243 = vmatpush.msra.mxu0 %v222_v10  ;;  %501 = vmatpush.msra.mxu1 %v222_v10 }
  0x40   : > { %505 = vmatpush.msra.mxu2 %v221_v11  ;;  %506 = vmatpush.msra.mxu3 %v221_v11 }
  0x41   : > { %244 = vmatpush.msra.mxu0 %v221_v11  ;;  %504 = vmatpush.msra.mxu1 %v221_v11 }
  0x42   : > { %508 = vmatpush.msra.mxu2 %v220_v12  ;;  %509 = vmatpush.msra.mxu3 %v220_v12 }
  0x43   : > { %245 = vmatpush.msra.mxu0 %v220_v12  ;;  %507 = vmatpush.msra.mxu1 %v220_v12 }
  0x44   : > { %511 = vmatpush.msra.mxu2 %v219_v13  ;;  %512 = vmatpush.msra.mxu3 %v219_v13 }
  0x45   : > { %246 = vmatpush.msra.mxu0 %v219_v13  ;;  %510 = vmatpush.msra.mxu1 %v219_v13 }
  0x46   : > { %514 = vmatpush.msra.mxu2 %v218_v14  ;;  %515 = vmatpush.msra.mxu3 %v218_v14 }
  0x47   : > { %247 = vmatpush.msra.mxu0 %v218_v14  ;;  %513 = vmatpush.msra.mxu1 %v218_v14 }
  0x48   : > { %517 = vmatpush.msra.mxu2 %v217_v15  ;;  %518 = vmatpush.msra.mxu3 %v217_v15 }
  0x49   : > { %297 = vmatmul.f32.vlgmr.msra.gmra.mxu2 %v201_v16  ;;  %321 = vmatmul.f32.vlgmr.msra.gmra.mxu3 %v209_v17 }
  0x4a   : > { %248 = vmatpush.msra.mxu0 %v217_v15  ;;  %516 = vmatpush.msra.mxu1 %v217_v15 }
  0x4b   : > { %249 = vmatmul.f32.vlgmr.msra.gmra.mxu0 %v185_v18  ;;  %273 = vmatmul.f32.vlgmr.msra.gmra.mxu1 %v193_v19 }
  0x51   : > { %300 = vmatmul.f32.gmra.mxu2 %v202_v20  ;;  %324 = vmatmul.f32.gmra.mxu3 %v210_v21 }
  0x53   : > { %252 = vmatmul.f32.gmra.mxu0 %v186_v22  ;;  %276 = vmatmul.f32.gmra.mxu1 %v194_v23 }
  0x59   : > { %303 = vmatmul.f32.gmra.mxu2 %v203_v24  ;;  %327 = vmatmul.f32.gmra.mxu3 %v211_v25 }
  0x5b   : > { %255 = vmatmul.f32.gmra.mxu0 %v187_v26  ;;  %279 = vmatmul.f32.gmra.mxu1 %v195_v27 }
  0x61   : > { %306 = vmatmul.f32.gmra.mxu2 %v204_v28  ;;  %330 = vmatmul.f32.gmra.mxu3 %v212_v29 }
  0x63   : > { %258 = vmatmul.f32.gmra.mxu0 %v188_v30  ;;  %282 = vmatmul.f32.gmra.mxu1 %v196_v31 }
  0x69   : > { %309 = vmatmul.f32.gmra.mxu2 %v205_v32  ;;  %333 = vmatmul.f32.gmra.mxu3 %v213_v33 }
  0x6b   : > { %261 = vmatmul.f32.gmra.mxu0 %v189_v34  ;;  %285 = vmatmul.f32.gmra.mxu1 %v197_v35 }
  0x71   : > { %312 = vmatmul.f32.gmra.mxu2 %v206_v36  ;;  %336 = vmatmul.f32.gmra.mxu3 %v214_v37 }
  0x73   : > { %264 = vmatmul.f32.gmra.mxu0 %v190_v38  ;;  %288 = vmatmul.f32.gmra.mxu1 %v198_v39 }
  0x79   : > { %315 = vmatmul.f32.gmra.mxu2 %v207_v40  ;;  %339 = vmatmul.f32.gmra.mxu3 %v215_v41 }
  0x7b   : > { %267 = vmatmul.f32.gmra.mxu0 %v191_v42  ;;  %291 = vmatmul.f32.gmra.mxu1 %v199_v43 }
  0x81   : > { %318 = vmatmul.f32.gmra.mxu2 %v208_v44  ;;  %342 = vmatmul.f32.gmra.mxu3 %v216_v45 }
  0x83   : > { %270 = vmatmul.f32.gmra.mxu0 %v192_v46  ;;  %294 = vmatmul.f32.gmra.mxu1 %v200_v47 }
  0xc8   : > { %v250_v48 = vpop.f32.mrf.mxu0  ;;  %v274_v49 = vpop.f32.mrf.mxu1 }
  0xc9   : > { %346 = vst [vmem:[%s822_s24] sm:$0xff] %v250_v48 }
  0xca   : > { %354 = vst [vmem:[%s822_s24 + $0x40] sm:$0xff] %v274_v49 }
  0xcc   : > { %v298_v50 = vpop.f32.mrf.mxu2  ;;  %v322_v51 = vpop.f32.mrf.mxu3 }
  0xcd   : > { %362 = vst [vmem:[%s822_s24 + $0x80] sm:$0xff] %v298_v50 }
  0xce   : > { %370 = vst [vmem:[%s822_s24 + $0xc0] sm:$0xff] %v322_v51 }
  0xd0   : > { %v253_v52 = vpop.f32.mrf.mxu0  ;;  %v277_v53 = vpop.f32.mrf.mxu1 }
  0xd1   : > { %347 = vst [vmem:[%s822_s24 + $0x8] sm:$0xff] %v253_v52 }
  0xd2   : > { %355 = vst [vmem:[%s822_s24 + $0x48] sm:$0xff] %v277_v53 }
  0xd4   : > { %v301_v54 = vpop.f32.mrf.mxu2  ;;  %v325_v55 = vpop.f32.mrf.mxu3 }
  0xd5   : > { %363 = vst [vmem:[%s822_s24 + $0x88] sm:$0xff] %v301_v54 }
  0xd6   : > { %371 = vst [vmem:[%s822_s24 + $0xc8] sm:$0xff] %v325_v55 }
  0xd8   : > { %v256_v56 = vpop.f32.mrf.mxu0  ;;  %v280_v57 = vpop.f32.mrf.mxu1 }
  0xd9   : > { %348 = vst [vmem:[%s822_s24 + $0x10] sm:$0xff] %v256_v56 }
  0xda   : > { %356 = vst [vmem:[%s822_s24 + $0x50] sm:$0xff] %v280_v57 }
  0xdc   : > { %v304_v58 = vpop.f32.mrf.mxu2  ;;  %v328_v59 = vpop.f32.mrf.mxu3 }
  0xdd   : > { %364 = vst [vmem:[%s822_s24 + $0x90] sm:$0xff] %v304_v58 }
  0xde   : > { %372 = vst [vmem:[%s822_s24 + $0xd0] sm:$0xff] %v328_v59 }
  0xe0   : > { %v259_v60 = vpop.f32.mrf.mxu0  ;;  %v283_v61 = vpop.f32.mrf.mxu1 }
  0xe1   : > { %349 = vst [vmem:[%s822_s24 + $0x18] sm:$0xff] %v259_v60 }
  0xe2   : > { %357 = vst [vmem:[%s822_s24 + $0x58] sm:$0xff] %v283_v61 }
  0xe4   : > { %v307_v62 = vpop.f32.mrf.mxu2  ;;  %v331_v63 = vpop.f32.mrf.mxu3 }
  0xe5   : > { %365 = vst [vmem:[%s822_s24 + $0x98] sm:$0xff] %v307_v62 }
  0xe6   : > { %373 = vst [vmem:[%s822_s24 + $0xd8] sm:$0xff] %v331_v63 }
  0xe8   : > { %v262_v0 = vpop.f32.mrf.mxu0  ;;  %v286_v1 = vpop.f32.mrf.mxu1 }
  0xe9   : > { %350 = vst [vmem:[%s822_s24 + $0x20] sm:$0xff] %v262_v0 }
  0xea   : > { %358 = vst [vmem:[%s822_s24 + $0x60] sm:$0xff] %v286_v1 }
  0xec   : > { %v310_v2 = vpop.f32.mrf.mxu2  ;;  %v334_v3 = vpop.f32.mrf.mxu3 }
  0xed   : > { %366 = vst [vmem:[%s822_s24 + $0xa0] sm:$0xff] %v310_v2 }
  0xee   : > { %374 = vst [vmem:[%s822_s24 + $0xe0] sm:$0xff] %v334_v3 }
  0xf0   : > { %v265_v4 = vpop.f32.mrf.mxu0  ;;  %v289_v5 = vpop.f32.mrf.mxu1 }
  0xf1   : > { %351 = vst [vmem:[%s822_s24 + $0x28] sm:$0xff] %v265_v4 }
  0xf2   : > { %359 = vst [vmem:[%s822_s24 + $0x68] sm:$0xff] %v289_v5 }
  0xf4   : > { %v313_v6 = vpop.f32.mrf.mxu2  ;;  %v337_v7 = vpop.f32.mrf.mxu3 }
  0xf5   : > { %367 = vst [vmem:[%s822_s24 + $0xa8] sm:$0xff] %v313_v6 }
  0xf6   : > { %375 = vst [vmem:[%s822_s24 + $0xe8] sm:$0xff] %v337_v7 }
  0xf8   : > { %v268_v8 = vpop.f32.mrf.mxu0  ;;  %v292_v9 = vpop.f32.mrf.mxu1 }
  0xf9   : > { %352 = vst [vmem:[%s822_s24 + $0x30] sm:$0xff] %v268_v8 }
  0xfa   : > { %360 = vst [vmem:[%s822_s24 + $0x70] sm:$0xff] %v292_v9 }
  0xfc   : > { %v316_v10 = vpop.f32.mrf.mxu2  ;;  %v340_v11 = vpop.f32.mrf.mxu3 }
  0xfd   : > { %368 = vst [vmem:[%s822_s24 + $0xb0] sm:$0xff] %v316_v10 }
  0xfe   : > { %376 = vst [vmem:[%s822_s24 + $0xf0] sm:$0xff] %v340_v11 }
 0x100   : > { %v271_v12 = vpop.f32.mrf.mxu0  ;;  %v295_v13 = vpop.f32.mrf.mxu1 }
 0x101   : > { %353 = vst [vmem:[%s822_s24 + $0x38] sm:$0xff] %v271_v12 }
 0x102   : > { %361 = vst [vmem:[%s822_s24 + $0x78] sm:$0xff] %v295_v13 }
 0x104   : > { %v319_v14 = vpop.f32.mrf.mxu2  ;;  %v343_v15 = vpop.f32.mrf.mxu3 }
 0x105   : > { %369 = vst [vmem:[%s822_s24 + $0xb8] sm:$0xff] %v319_v14 }
 0x106   : > { %377 = vst [vmem:[%s822_s24 + $0xf8] sm:$0xff] %v343_v15 }
 0x107 PF: > { %p13_p4 = scmp.ge.s32.totalorder %s735_s22, 4   ;;  %s876_s9 = smov %s661_s10 }
 0x108   : > { %s877_s10 = smov %s665_s11  ;;  %s878_s11 = smov %s748_s27 }
 0x109   : > { %s879_s12 = smov %s735_s22  ;;  %15 = sbr.rel (!%p13_p4) target bundleno = 4 (0x4), region = 72 }
 0x10e   :  { %400 = vsyncpa [#allocation3], 1 }
 0x10f   :  { %402 = vsyncpa [#allocation3 + $0x1], 1 }
 0x110   :  { %403 = vsyncpa [#allocation5], 1 }

// kernel: weighted_permute_mlp_pallas.7
= control target key start
LH: loop header
LB: loop body
LE: loop exit
PB: predicated region body
PF: predicated region fallthrough
CT: control target
= control target key end

     0   :  { %s1250_s1 = inlined_call_operand.vmem [shape: f32[256,256], index: 1, kind: input, shape index: {}]   ;;  %s1251_s0 = inlined_call_operand.vmem [shape: f32[256,256], index: 0, kind: input, shape index: {}]   ;;  %s1252_s2 = inlined_call_operand.vmem [shape: f32[256,256], index: 2, kind: output, shape index: {}]  }
   0x1   :  { %v106_v0 = vld [vmem:[%s1250_s1 + $0xf8] sm:$0xff]  ;;  %v104_v2 = vld [vmem:[%s1250_s1 + $0xe8] sm:$0xff]  ;;  %v105_v6 = vld [vmem:[%s1250_s1 + $0xf0] sm:$0xff] }
   0x2   :  { %v138_v1 = vld [vmem:[%s1250_s1 + $0x1f8] sm:$0xff]  ;;  %365 = vmatpush.msra.mxu2 %v106_v0  ;;  %v136_v3 = vld [vmem:[%s1250_s1 + $0x1e8] sm:$0xff]  ;;  %v137_v7 = vld [vmem:[%s1250_s1 + $0x1f0] sm:$0xff]  ;;  %139 = vmatpush.msra.mxu0 %v105_v6 }
   0x3   :  { %478 = vmatpush.msra.mxu3 %v138_v1  ;;  %v102_v4 = vld [vmem:[%s1250_s1 + $0xd8] sm:$0xff]  ;;  %v103_v8 = vld [vmem:[%s1250_s1 + $0xe0] sm:$0xff]  ;;  %252 = vmatpush.msra.mxu1 %v137_v7  ;;  %v100_v10 = vld [vmem:[%s1250_s1 + $0xc8] sm:$0xff] }
   0x4   :  { %v134_v5 = vld [vmem:[%s1250_s1 + $0x1d8] sm:$0xff]  ;;  %366 = vmatpush.msra.mxu2 %v104_v2  ;;  %v135_v9 = vld [vmem:[%s1250_s1 + $0x1e0] sm:$0xff]  ;;  %v132_v11 = vld [vmem:[%s1250_s1 + $0x1c8] sm:$0xff]  ;;  %140 = vmatpush.msra.mxu0 %v103_v8 }
   0x5   :  { %479 = vmatpush.msra.mxu3 %v136_v3  ;;  %v101_v12 = vld [vmem:[%s1250_s1 + $0xd0] sm:$0xff]  ;;  %253 = vmatpush.msra.mxu1 %v135_v9  ;;  %v98_v14 = vld [vmem:[%s1250_s1 + $0xb8] sm:$0xff]  ;;  %v99_v16 = vld [vmem:[%s1250_s1 + $0xc0] sm:$0xff] }
   0x6   :  { %367 = vmatpush.msra.mxu2 %v102_v4  ;;  %v133_v13 = vld [vmem:[%s1250_s1 + $0x1d0] sm:$0xff]  ;;  %v130_v15 = vld [vmem:[%s1250_s1 + $0x1b8] sm:$0xff]  ;;  %v131_v17 = vld [vmem:[%s1250_s1 + $0x1c0] sm:$0xff]  ;;  %141 = vmatpush.msra.mxu0 %v101_v12 }
   0x7   :  { %480 = vmatpush.msra.mxu3 %v134_v5  ;;  %254 = vmatpush.msra.mxu1 %v133_v13  ;;  %v96_v18 = vld [vmem:[%s1250_s1 + $0xa8] sm:$0xff]  ;;  %v97_v20 = vld [vmem:[%s1250_s1 + $0xb0] sm:$0xff]  ;;  %v94_v22 = vld [vmem:[%s1250_s1 + $0x98] sm:$0xff] }
   0x8   :  { %368 = vmatpush.msra.mxu2 %v100_v10  ;;  %v128_v19 = vld [vmem:[%s1250_s1 + $0x1a8] sm:$0xff]  ;;  %v129_v21 = vld [vmem:[%s1250_s1 + $0x1b0] sm:$0xff]  ;;  %142 = vmatpush.msra.mxu0 %v99_v16  ;;  %v126_v23 = vld [vmem:[%s1250_s1 + $0x198] sm:$0xff] }
   0x9   :  { %481 = vmatpush.msra.mxu3 %v132_v11  ;;  %255 = vmatpush.msra.mxu1 %v131_v17  ;;  %v95_v24 = vld [vmem:[%s1250_s1 + $0xa0] sm:$0xff]  ;;  %v92_v26 = vld [vmem:[%s1250_s1 + $0x88] sm:$0xff]  ;;  %v93_v28 = vld [vmem:[%s1250_s1 + $0x90] sm:$0xff] }
   0xa   :  { %369 = vmatpush.msra.mxu2 %v98_v14  ;;  %v127_v25 = vld [vmem:[%s1250_s1 + $0x1a0] sm:$0xff]  ;;  %143 = vmatpush.msra.mxu0 %v97_v20  ;;  %v124_v27 = vld [vmem:[%s1250_s1 + $0x188] sm:$0xff]  ;;  %v125_v29 = vld [vmem:[%s1250_s1 + $0x190] sm:$0xff] }
   0xb   :  { %482 = vmatpush.msra.mxu3 %v130_v15  ;;  %256 = vmatpush.msra.mxu1 %v129_v21  ;;  %v90_v30 = vld [vmem:[%s1250_s1 + $0x78] sm:$0xff]  ;;  %v91_v32 = vld [vmem:[%s1250_s1 + $0x80] sm:$0xff]  ;;  %v88_v34 = vld [vmem:[%s1250_s1 + $0x68] sm:$0xff] }
   0xc   :  { %370 = vmatpush.msra.mxu2 %v96_v18  ;;  %144 = vmatpush.msra.mxu0 %v95_v24  ;;  %v122_v31 = vld [vmem:[%s1250_s1 + $0x178] sm:$0xff]  ;;  %v123_v33 = vld [vmem:[%s1250_s1 + $0x180] sm:$0xff]  ;;  %v120_v35 = vld [vmem:[%s1250_s1 + $0x168] sm:$0xff] }
   0xd   :  { %483 = vmatpush.msra.mxu3 %v128_v19  ;;  %257 = vmatpush.msra.mxu1 %v127_v25  ;;  %v89_v36 = vld [vmem:[%s1250_s1 + $0x70] sm:$0xff]  ;;  %v86_v38 = vld [vmem:[%s1250_s1 + $0x58] sm:$0xff]  ;;  %v87_v40 = vld [vmem:[%s1250_s1 + $0x60] sm:$0xff] }
   0xe   :  { %371 = vmatpush.msra.mxu2 %v94_v22  ;;  %145 = vmatpush.msra.mxu0 %v93_v28  ;;  %v121_v37 = vld [vmem:[%s1250_s1 + $0x170] sm:$0xff]  ;;  %v118_v39 = vld [vmem:[%s1250_s1 + $0x158] sm:$0xff]  ;;  %v119_v41 = vld [vmem:[%s1250_s1 + $0x160] sm:$0xff] }
   0xf   :  { %484 = vmatpush.msra.mxu3 %v126_v23  ;;  %258 = vmatpush.msra.mxu1 %v125_v29  ;;  %v84_v42 = vld [vmem:[%s1250_s1 + $0x48] sm:$0xff]  ;;  %v85_v44 = vld [vmem:[%s1250_s1 + $0x50] sm:$0xff]  ;;  %v82_v46 = vld [vmem:[%s1250_s1 + $0x38] sm:$0xff] }
  0x10   :  { %372 = vmatpush.msra.mxu2 %v92_v26  ;;  %146 = vmatpush.msra.mxu0 %v91_v32  ;;  %v116_v43 = vld [vmem:[%s1250_s1 + $0x148] sm:$0xff]  ;;  %v117_v45 = vld [vmem:[%s1250_s1 + $0x150] sm:$0xff]  ;;  %v114_v47 = vld [vmem:[%s1250_s1 + $0x138] sm:$0xff] }
  0x11   :  { %485 = vmatpush.msra.mxu3 %v124_v27  ;;  %259 = vmatpush.msra.mxu1 %v123_v33  ;;  %v83_v48 = vld [vmem:[%s1250_s1 + $0x40] sm:$0xff]  ;;  %v80_v50 = vld [vmem:[%s1250_s1 + $0x28] sm:$0xff]  ;;  %v81_v52 = vld [vmem:[%s1250_s1 + $0x30] sm:$0xff] }
  0x12   :  { %373 = vmatpush.msra.mxu2 %v90_v30  ;;  %147 = vmatpush.msra.mxu0 %v89_v36  ;;  %v115_v49 = vld [vmem:[%s1250_s1 + $0x140] sm:$0xff]  ;;  %v112_v51 = vld [vmem:[%s1250_s1 + $0x128] sm:$0xff]  ;;  %v113_v53 = vld [vmem:[%s1250_s1 + $0x130] sm:$0xff] }
  0x13   :  { %486 = vmatpush.msra.mxu3 %v122_v31  ;;  %260 = vmatpush.msra.mxu1 %v121_v37  ;;  %v78_v54 = vld [vmem:[%s1250_s1 + $0x18] sm:$0xff]  ;;  %v79_v56 = vld [vmem:[%s1250_s1 + $0x20] sm:$0xff]  ;;  %v76_v58 = vld [vmem:[%s1250_s1 + $0x8] sm:$0xff] }
  0x14   :  { %374 = vmatpush.msra.mxu2 %v88_v34  ;;  %148 = vmatpush.msra.mxu0 %v87_v40  ;;  %v110_v55 = vld [vmem:[%s1250_s1 + $0x118] sm:$0xff]  ;;  %v111_v57 = vld [vmem:[%s1250_s1 + $0x120] sm:$0xff]  ;;  %v108_v59 = vld [vmem:[%s1250_s1 + $0x108] sm:$0xff] }
  0x15   :  { %487 = vmatpush.msra.mxu3 %v120_v35  ;;  %261 = vmatpush.msra.mxu1 %v119_v41  ;;  %v11_v60 = vld [vmem:[%s1251_s0] sm:$0xff]  ;;  %v12_v61 = vld [vmem:[%s1251_s0 + $0x8] sm:$0xff]  ;;  %v77_v62 = vld [vmem:[%s1250_s1 + $0x10] sm:$0xff] }
  0x16   :  { %375 = vmatpush.msra.mxu2 %v86_v38  ;;  %149 = vmatpush.msra.mxu0 %v85_v44  ;;  %v109_v63 = vld [vmem:[%s1250_s1 + $0x110] sm:$0xff]  ;;  %v75_v0 = vld [vmem:[%s1250_s1] sm:$0xff]  ;;  %v14_v3 = vld [vmem:[%s1251_s0 + $0x18] sm:$0xff] }
  0x17   :  { %488 = vmatpush.msra.mxu3 %v118_v39  ;;  %262 = vmatpush.msra.mxu1 %v117_v45  ;;  %v107_v1 = vld [vmem:[%s1250_s1 + $0x100] sm:$0xff]  ;;  %v13_v2 = vld [vmem:[%s1251_s0 + $0x10] sm:$0xff]  ;;  %v16_v5 = vld [vmem:[%s1251_s0 + $0x28] sm:$0xff] }
  0x18   :  { %376 = vmatpush.msra.mxu2 %v84_v42  ;;  %150 = vmatpush.msra.mxu0 %v83_v48  ;;  %v15_v4 = vld [vmem:[%s1251_s0 + $0x20] sm:$0xff]  ;;  %v17_v6 = vld [vmem:[%s1251_s0 + $0x30] sm:$0xff]  ;;  %v18_v7 = vld [vmem:[%s1251_s0 + $0x38] sm:$0xff] }
  0x19   :  { %489 = vmatpush.msra.mxu3 %v116_v43  ;;  %263 = vmatpush.msra.mxu1 %v115_v49  ;;  %v19_v8 = vld [vmem:[%s1251_s0 + $0x40] sm:$0xff]  ;;  %v20_v9 = vld [vmem:[%s1251_s0 + $0x48] sm:$0xff]  ;;  %v21_v10 = vld [vmem:[%s1251_s0 + $0x50] sm:$0xff] }
  0x1a   :  { %377 = vmatpush.msra.mxu2 %v82_v46  ;;  %151 = vmatpush.msra.mxu0 %v81_v52  ;;  %v22_v11 = vld [vmem:[%s1251_s0 + $0x58] sm:$0xff]  ;;  %v23_v12 = vld [vmem:[%s1251_s0 + $0x60] sm:$0xff]  ;;  %v24_v13 = vld [vmem:[%s1251_s0 + $0x68] sm:$0xff] }
  0x1b   :  { %490 = vmatpush.msra.mxu3 %v114_v47  ;;  %264 = vmatpush.msra.mxu1 %v113_v53  ;;  %v25_v14 = vld [vmem:[%s1251_s0 + $0x70] sm:$0xff]  ;;  %v26_v15 = vld [vmem:[%s1251_s0 + $0x78] sm:$0xff]  ;;  %v27_v16 = vld [vmem:[%s1251_s0 + $0x80] sm:$0xff] }
  0x1c   :  { %378 = vmatpush.msra.mxu2 %v80_v50  ;;  %152 = vmatpush.msra.mxu0 %v79_v56  ;;  %v28_v17 = vld [vmem:[%s1251_s0 + $0x88] sm:$0xff]  ;;  %v29_v18 = vld [vmem:[%s1251_s0 + $0x90] sm:$0xff]  ;;  %v30_v19 = vld [vmem:[%s1251_s0 + $0x98] sm:$0xff] }
  0x1d   :  { %491 = vmatpush.msra.mxu3 %v112_v51  ;;  %265 = vmatpush.msra.mxu1 %v111_v57  ;;  %v31_v20 = vld [vmem:[%s1251_s0 + $0xa0] sm:$0xff]  ;;  %v32_v21 = vld [vmem:[%s1251_s0 + $0xa8] sm:$0xff]  ;;  %v33_v22 = vld [vmem:[%s1251_s0 + $0xb0] sm:$0xff] }
  0x1e   :  { %379 = vmatpush.msra.mxu2 %v78_v54  ;;  %153 = vmatpush.msra.mxu0 %v77_v62  ;;  %v34_v23 = vld [vmem:[%s1251_s0 + $0xb8] sm:$0xff]  ;;  %v35_v24 = vld [vmem:[%s1251_s0 + $0xc0] sm:$0xff]  ;;  %v36_v25 = vld [vmem:[%s1251_s0 + $0xc8] sm:$0xff] }
  0x1f   :  { %492 = vmatpush.msra.mxu3 %v110_v55  ;;  %266 = vmatpush.msra.mxu1 %v109_v63  ;;  %v37_v26 = vld [vmem:[%s1251_s0 + $0xd0] sm:$0xff]  ;;  %v38_v27 = vld [vmem:[%s1251_s0 + $0xd8] sm:$0xff]  ;;  %v39_v28 = vld [vmem:[%s1251_s0 + $0xe0] sm:$0xff] }
  0x20   :  { %380 = vmatpush.msra.mxu2 %v76_v58  ;;  %154 = vmatpush.msra.mxu0 %v75_v0  ;;  %v40_v29 = vld [vmem:[%s1251_s0 + $0xe8] sm:$0xff]  ;;  %v41_v30 = vld [vmem:[%s1251_s0 + $0xf0] sm:$0xff]  ;;  %v42_v31 = vld [vmem:[%s1251_s0 + $0xf8] sm:$0xff] }
  0x21   :  { %493 = vmatpush.msra.mxu3 %v108_v59  ;;  %381 = vmatmul.f32.vlgmr.msra.gmra.mxu2 %v11_v60  ;;  %v43_v32 = vld [vmem:[%s1251_s0 + $0x100] sm:$0xff]  ;;  %v44_v33 = vld [vmem:[%s1251_s0 + $0x108] sm:$0xff]  ;;  %v45_v40 = vld [vmem:[%s1251_s0 + $0x110] sm:$0xff] }
  0x22   :  { %494 = vmatmul.f32.vlgmr.msra.gmra.mxu3 %v12_v61  ;;  %267 = vmatpush.msra.mxu1 %v107_v1  ;;  %v46_v41 = vld [vmem:[%s1251_s0 + $0x118] sm:$0xff]  ;;  %v47_v48 = vld [vmem:[%s1251_s0 + $0x120] sm:$0xff]  ;;  %v48_v49 = vld [vmem:[%s1251_s0 + $0x128] sm:$0xff] }
  0x23   :  { %155 = vmatmul.f32.vlgmr.msra.gmra.mxu0 %v11_v60  ;;  %268 = vmatmul.f32.vlgmr.msra.gmra.mxu1 %v12_v61  ;;  %v49_v56 = vld [vmem:[%s1251_s0 + $0x130] sm:$0xff]  ;;  %v50_v57 = vld [vmem:[%s1251_s0 + $0x138] sm:$0xff]  ;;  %v51_v0 = vld [vmem:[%s1251_s0 + $0x140] sm:$0xff] }
  0x24   :  { %v52_v1 = vld [vmem:[%s1251_s0 + $0x148] sm:$0xff] }
  0x29   :  { %384 = vmatmul.f32.gmra.mxu2 %v13_v2 }
  0x2a   :  { %497 = vmatmul.f32.gmra.mxu3 %v14_v3 }
  0x2b   :  { %158 = vmatmul.f32.gmra.mxu0 %v13_v2  ;;  %271 = vmatmul.f32.gmra.mxu1 %v14_v3 }
  0x31   :  { %387 = vmatmul.f32.gmra.mxu2 %v15_v4 }
  0x32   :  { %500 = vmatmul.f32.gmra.mxu3 %v16_v5 }
  0x33   :  { %161 = vmatmul.f32.gmra.mxu0 %v15_v4  ;;  %274 = vmatmul.f32.gmra.mxu1 %v16_v5 }
  0x39   :  { %390 = vmatmul.f32.gmra.mxu2 %v17_v6 }
  0x3a   :  { %503 = vmatmul.f32.gmra.mxu3 %v18_v7 }
  0x3b   :  { %164 = vmatmul.f32.gmra.mxu0 %v17_v6  ;;  %277 = vmatmul.f32.gmra.mxu1 %v18_v7 }
  0x41   :  { %393 = vmatmul.f32.gmra.mxu2 %v19_v8 }
  0x42   :  { %506 = vmatmul.f32.gmra.mxu3 %v20_v9 }
  0x43   :  { %167 = vmatmul.f32.gmra.mxu0 %v19_v8  ;;  %280 = vmatmul.f32.gmra.mxu1 %v20_v9  ;;  %v53_v8 = vld [vmem:[%s1251_s0 + $0x150] sm:$0xff]  ;;  %v54_v9 = vld [vmem:[%s1251_s0 + $0x158] sm:$0xff] }
  0x49   :  { %396 = vmatmul.f32.gmra.mxu2 %v21_v10 }
  0x4a   :  { %509 = vmatmul.f32.gmra.mxu3 %v22_v11 }
  0x4b   :  { %170 = vmatmul.f32.gmra.mxu0 %v21_v10  ;;  %283 = vmatmul.f32.gmra.mxu1 %v22_v11 }
  0x51   :  { %399 = vmatmul.f32.gmra.mxu2 %v23_v12 }
  0x52   :  { %512 = vmatmul.f32.gmra.mxu3 %v24_v13 }
  0x53   :  { %173 = vmatmul.f32.gmra.mxu0 %v23_v12  ;;  %286 = vmatmul.f32.gmra.mxu1 %v24_v13 }
  0x59   :  { %402 = vmatmul.f32.gmra.mxu2 %v25_v14 }
  0x5a   :  { %515 = vmatmul.f32.gmra.mxu3 %v26_v15 }
  0x5b   :  { %176 = vmatmul.f32.gmra.mxu0 %v25_v14  ;;  %289 = vmatmul.f32.gmra.mxu1 %v26_v15 }
  0x61   :  { %405 = vmatmul.f32.gmra.mxu2 %v27_v16 }
  0x62   :  { %518 = vmatmul.f32.gmra.mxu3 %v28_v17 }
  0x63   :  { %179 = vmatmul.f32.gmra.mxu0 %v27_v16  ;;  %292 = vmatmul.f32.gmra.mxu1 %v28_v17  ;;  %v55_v16 = vld [vmem:[%s1251_s0 + $0x160] sm:$0xff]  ;;  %v56_v17 = vld [vmem:[%s1251_s0 + $0x168] sm:$0xff] }
  0x69   :  { %408 = vmatmul.f32.gmra.mxu2 %v29_v18 }
  0x6a   :  { %521 = vmatmul.f32.gmra.mxu3 %v30_v19 }
  0x6b   :  { %182 = vmatmul.f32.gmra.mxu0 %v29_v18  ;;  %295 = vmatmul.f32.gmra.mxu1 %v30_v19 }
  0x71   :  { %411 = vmatmul.f32.gmra.mxu2 %v31_v20 }
  0x72   :  { %524 = vmatmul.f32.gmra.mxu3 %v32_v21 }
  0x73   :  { %185 = vmatmul.f32.gmra.mxu0 %v31_v20  ;;  %298 = vmatmul.f32.gmra.mxu1 %v32_v21 }
  0x79   :  { %414 = vmatmul.f32.gmra.mxu2 %v33_v22 }
  0x7a   :  { %527 = vmatmul.f32.gmra.mxu3 %v34_v23 }
  0x7b   :  { %188 = vmatmul.f32.gmra.mxu0 %v33_v22  ;;  %301 = vmatmul.f32.gmra.mxu1 %v34_v23 }
  0x81   :  { %417 = vmatmul.f32.gmra.mxu2 %v35_v24 }
  0x82   :  { %530 = vmatmul.f32.gmra.mxu3 %v36_v25 }
  0x83   :  { %191 = vmatmul.f32.gmra.mxu0 %v35_v24  ;;  %304 = vmatmul.f32.gmra.mxu1 %v36_v25  ;;  %v57_v24 = vld [vmem:[%s1251_s0 + $0x170] sm:$0xff]  ;;  %v58_v25 = vld [vmem:[%s1251_s0 + $0x178] sm:$0xff] }
  0x89   :  { %420 = vmatmul.f32.gmra.mxu2 %v37_v26 }
  0x8a   :  { %533 = vmatmul.f32.gmra.mxu3 %v38_v27 }
  0x8b   :  { %194 = vmatmul.f32.gmra.mxu0 %v37_v26  ;;  %307 = vmatmul.f32.gmra.mxu1 %v38_v27 }
  0x91   :  { %423 = vmatmul.f32.gmra.mxu2 %v39_v28 }
  0x92   :  { %536 = vmatmul.f32.gmra.mxu3 %v40_v29 }
  0x93   :  { %197 = vmatmul.f32.gmra.mxu0 %v39_v28  ;;  %310 = vmatmul.f32.gmra.mxu1 %v40_v29 }
  0x99   :  { %426 = vmatmul.f32.gmra.mxu2 %v41_v30 }
  0x9a   :  { %539 = vmatmul.f32.gmra.mxu3 %v42_v31 }
  0x9b   :  { %200 = vmatmul.f32.gmra.mxu0 %v41_v30  ;;  %313 = vmatmul.f32.gmra.mxu1 %v42_v31 }
  0xa0   :  { %v156_v34 = vpop.f32.mrf.mxu0  ;;  %v269_v35 = vpop.f32.mrf.mxu1 }
  0xa1   :  { %429 = vmatmul.f32.gmra.mxu2 %v43_v32  ;;  %v270_v36 = vadd.f32 %v269_v35, %v156_v34 }
  0xa2   :  { %542 = vmatmul.f32.gmra.mxu3 %v44_v33 }
  0xa3   :  { %591 = vst [vmem:[%s1252_s2] sm:$0xff] %v270_v36  ;;  %203 = vmatmul.f32.gmra.mxu0 %v43_v32  ;;  %316 = vmatmul.f32.gmra.mxu1 %v44_v33  ;;  %v59_v32 = vld [vmem:[%s1251_s0 + $0x180] sm:$0xff]  ;;  %v60_v33 = vld [vmem:[%s1251_s0 + $0x188] sm:$0xff] }
  0xa4   :  { %v382_v37 = vpop.f32.mrf.mxu2 }
  0xa5   :  { %v495_v38 = vpop.f32.mrf.mxu3 }
  0xa6   :  { %v496_v39 = vadd.f32 %v495_v38, %v382_v37 }
  0xa8   :  { %592 = vst [vmem:[%s1252_s2 + $0x8] sm:$0xff] %v496_v39  ;;  %v159_v42 = vpop.f32.mrf.mxu0  ;;  %v272_v43 = vpop.f32.mrf.mxu1 }
  0xa9   :  { %432 = vmatmul.f32.gmra.mxu2 %v45_v40  ;;  %v273_v44 = vadd.f32 %v272_v43, %v159_v42 }
  0xaa   :  { %545 = vmatmul.f32.gmra.mxu3 %v46_v41 }
  0xab   :  { %593 = vst [vmem:[%s1252_s2 + $0x10] sm:$0xff] %v273_v44  ;;  %206 = vmatmul.f32.gmra.mxu0 %v45_v40  ;;  %319 = vmatmul.f32.gmra.mxu1 %v46_v41  ;;  %v61_v40 = vld [vmem:[%s1251_s0 + $0x190] sm:$0xff]  ;;  %v62_v41 = vld [vmem:[%s1251_s0 + $0x198] sm:$0xff] }
  0xac   :  { %v385_v45 = vpop.f32.mrf.mxu2 }
  0xad   :  { %v498_v46 = vpop.f32.mrf.mxu3 }
  0xae   :  { %v499_v47 = vadd.f32 %v498_v46, %v385_v45 }
  0xb0   :  { %594 = vst [vmem:[%s1252_s2 + $0x18] sm:$0xff] %v499_v47  ;;  %v162_v50 = vpop.f32.mrf.mxu0  ;;  %v275_v51 = vpop.f32.mrf.mxu1 }
  0xb1   :  { %435 = vmatmul.f32.gmra.mxu2 %v47_v48  ;;  %v276_v52 = vadd.f32 %v275_v51, %v162_v50 }
  0xb2   :  { %548 = vmatmul.f32.gmra.mxu3 %v48_v49 }
  0xb3   :  { %595 = vst [vmem:[%s1252_s2 + $0x20] sm:$0xff] %v276_v52  ;;  %209 = vmatmul.f32.gmra.mxu0 %v47_v48  ;;  %322 = vmatmul.f32.gmra.mxu1 %v48_v49  ;;  %v63_v48 = vld [vmem:[%s1251_s0 + $0x1a0] sm:$0xff]  ;;  %v64_v49 = vld [vmem:[%s1251_s0 + $0x1a8] sm:$0xff] }
  0xb4   :  { %v388_v53 = vpop.f32.mrf.mxu2 }
  0xb5   :  { %v501_v54 = vpop.f32.mrf.mxu3 }
  0xb6   :  { %v502_v55 = vadd.f32 %v501_v54, %v388_v53 }
  0xb8   :  { %596 = vst [vmem:[%s1252_s2 + $0x28] sm:$0xff] %v502_v55  ;;  %v165_v58 = vpop.f32.mrf.mxu0  ;;  %v278_v59 = vpop.f32.mrf.mxu1 }
  0xb9   :  { %438 = vmatmul.f32.gmra.mxu2 %v49_v56  ;;  %v279_v60 = vadd.f32 %v278_v59, %v165_v58 }
  0xba   :  { %551 = vmatmul.f32.gmra.mxu3 %v50_v57 }
  0xbb   :  { %597 = vst [vmem:[%s1252_s2 + $0x30] sm:$0xff] %v279_v60  ;;  %212 = vmatmul.f32.gmra.mxu0 %v49_v56  ;;  %325 = vmatmul.f32.gmra.mxu1 %v50_v57  ;;  %v65_v56 = vld [vmem:[%s1251_s0 + $0x1b0] sm:$0xff]  ;;  %v66_v57 = vld [vmem:[%s1251_s0 + $0x1b8] sm:$0xff] }
  0xbc   :  { %v391_v61 = vpop.f32.mrf.mxu2 }
  0xbd   :  { %v504_v62 = vpop.f32.mrf.mxu3 }
  0xbe   :  { %v505_v63 = vadd.f32 %v504_v62, %v391_v61 }
  0xc0   :  { %598 = vst [vmem:[%s1252_s2 + $0x38] sm:$0xff] %v505_v63  ;;  %v168_v2 = vpop.f32.mrf.mxu0  ;;  %v281_v3 = vpop.f32.mrf.mxu1 }
  0xc1   :  { %441 = vmatmul.f32.gmra.mxu2 %v51_v0  ;;  %v282_v4 = vadd.f32 %v281_v3, %v168_v2 }
  0xc2   :  { %554 = vmatmul.f32.gmra.mxu3 %v52_v1 }
  0xc3   :  { %599 = vst [vmem:[%s1252_s2 + $0x40] sm:$0xff] %v282_v4  ;;  %215 = vmatmul.f32.gmra.mxu0 %v51_v0  ;;  %328 = vmatmul.f32.gmra.mxu1 %v52_v1  ;;  %v67_v0 = vld [vmem:[%s1251_s0 + $0x1c0] sm:$0xff]  ;;  %v68_v1 = vld [vmem:[%s1251_s0 + $0x1c8] sm:$0xff] }
  0xc4   :  { %v394_v5 = vpop.f32.mrf.mxu2 }
  0xc5   :  { %v507_v6 = vpop.f32.mrf.mxu3 }
  0xc6   :  { %v508_v7 = vadd.f32 %v507_v6, %v394_v5 }
  0xc8   :  { %600 = vst [vmem:[%s1252_s2 + $0x48] sm:$0xff] %v508_v7  ;;  %v171_v10 = vpop.f32.mrf.mxu0  ;;  %v284_v11 = vpop.f32.mrf.mxu1 }
  0xc9   :  { %444 = vmatmul.f32.gmra.mxu2 %v53_v8  ;;  %v285_v12 = vadd.f32 %v284_v11, %v171_v10 }
  0xca   :  { %557 = vmatmul.f32.gmra.mxu3 %v54_v9 }
  0xcb   :  { %601 = vst [vmem:[%s1252_s2 + $0x50] sm:$0xff] %v285_v12  ;;  %218 = vmatmul.f32.gmra.mxu0 %v53_v8  ;;  %331 = vmatmul.f32.gmra.mxu1 %v54_v9  ;;  %v69_v8 = vld [vmem:[%s1251_s0 + $0x1d0] sm:$0xff]  ;;  %v70_v9 = vld [vmem:[%s1251_s0 + $0x1d8] sm:$0xff] }
  0xcc   :  { %v397_v13 = vpop.f32.mrf.mxu2 }
  0xcd   :  { %v510_v14 = vpop.f32.mrf.mxu3 }
  0xce   :  { %v511_v15 = vadd.f32 %v510_v14, %v397_v13 }
  0xd0   :  { %602 = vst [vmem:[%s1252_s2 + $0x58] sm:$0xff] %v511_v15  ;;  %v174_v18 = vpop.f32.mrf.mxu0  ;;  %v287_v19 = vpop.f32.mrf.mxu1 }
  0xd1   :  { %447 = vmatmul.f32.gmra.mxu2 %v55_v16  ;;  %v288_v20 = vadd.f32 %v287_v19, %v174_v18 }
  0xd2   :  { %560 = vmatmul.f32.gmra.mxu3 %v56_v17 }
  0xd3   :  { %603 = vst [vmem:[%s1252_s2 + $0x60] sm:$0xff] %v288_v20  ;;  %221 = vmatmul.f32.gmra.mxu0 %v55_v16  ;;  %334 = vmatmul.f32.gmra.mxu1 %v56_v17  ;;  %v71_v16 = vld [vmem:[%s1251_s0 + $0x1e0] sm:$0xff]  ;;  %v72_v17 = vld [vmem:[%s1251_s0 + $0x1e8] sm:$0xff] }
  0xd4   :  { %v400_v21 = vpop.f32.mrf.mxu2 }
  0xd5   :  { %v513_v22 = vpop.f32.mrf.mxu3 }
  0xd6   :  { %v514_v23 = vadd.f32 %v513_v22, %v400_v21 }
  0xd8   :  { %604 = vst [vmem:[%s1252_s2 + $0x68] sm:$0xff] %v514_v23  ;;  %v177_v26 = vpop.f32.mrf.mxu0  ;;  %v290_v27 = vpop.f32.mrf.mxu1 }
  0xd9   :  { %450 = vmatmul.f32.gmra.mxu2 %v57_v24  ;;  %v291_v28 = vadd.f32 %v290_v27, %v177_v26 }
  0xda   :  { %563 = vmatmul.f32.gmra.mxu3 %v58_v25 }
  0xdb   :  { %605 = vst [vmem:[%s1252_s2 + $0x70] sm:$0xff] %v291_v28  ;;  %224 = vmatmul.f32.gmra.mxu0 %v57_v24  ;;  %337 = vmatmul.f32.gmra.mxu1 %v58_v25  ;;  %v73_v24 = vld [vmem:[%s1251_s0 + $0x1f0] sm:$0xff]  ;;  %v74_v25 = vld [vmem:[%s1251_s0 + $0x1f8] sm:$0xff] }
  0xdc   :  { %v403_v29 = vpop.f32.mrf.mxu2 }
  0xdd   :  { %v516_v30 = vpop.f32.mrf.mxu3 }
  0xde   :  { %v517_v31 = vadd.f32 %v516_v30, %v403_v29 }
  0xe0   :  { %606 = vst [vmem:[%s1252_s2 + $0x78] sm:$0xff] %v517_v31  ;;  %v180_v34 = vpop.f32.mrf.mxu0  ;;  %v293_v35 = vpop.f32.mrf.mxu1 }
  0xe1   :  { %453 = vmatmul.f32.gmra.mxu2 %v59_v32  ;;  %v294_v36 = vadd.f32 %v293_v35, %v180_v34 }
  0xe2   :  { %566 = vmatmul.f32.gmra.mxu3 %v60_v33 }
  0xe3   :  { %607 = vst [vmem:[%s1252_s2 + $0x80] sm:$0xff] %v294_v36  ;;  %227 = vmatmul.f32.gmra.mxu0 %v59_v32  ;;  %340 = vmatmul.f32.gmra.mxu1 %v60_v33 }
  0xe4   :  { %v406_v37 = vpop.f32.mrf.mxu2 }
  0xe5   :  { %v519_v38 = vpop.f32.mrf.mxu3 }
  0xe6   :  { %v520_v39 = vadd.f32 %v519_v38, %v406_v37 }
  0xe8   :  { %608 = vst [vmem:[%s1252_s2 + $0x88] sm:$0xff] %v520_v39  ;;  %v183_v42 = vpop.f32.mrf.mxu0  ;;  %v296_v43 = vpop.f32.mrf.mxu1 }
  0xe9   :  { %456 = vmatmul.f32.gmra.mxu2 %v61_v40  ;;  %v297_v44 = vadd.f32 %v296_v43, %v183_v42 }
  0xea   :  { %569 = vmatmul.f32.gmra.mxu3 %v62_v41 }
  0xeb   :  { %609 = vst [vmem:[%s1252_s2 + $0x90] sm:$0xff] %v297_v44  ;;  %230 = vmatmul.f32.gmra.mxu0 %v61_v40  ;;  %343 = vmatmul.f32.gmra.mxu1 %v62_v41 }
  0xec   :  { %v409_v45 = vpop.f32.mrf.mxu2 }
  0xed   :  { %v522_v46 = vpop.f32.mrf.mxu3 }
  0xee   :  { %v523_v47 = vadd.f32 %v522_v46, %v409_v45 }
  0xf0   :  { %610 = vst [vmem:[%s1252_s2 + $0x98] sm:$0xff] %v523_v47  ;;  %v186_v50 = vpop.f32.mrf.mxu0  ;;  %v299_v51 = vpop.f32.mrf.mxu1 }
  0xf1   :  { %459 = vmatmul.f32.gmra.mxu2 %v63_v48  ;;  %v300_v52 = vadd.f32 %v299_v51, %v186_v50 }
  0xf2   :  { %572 = vmatmul.f32.gmra.mxu3 %v64_v49 }
  0xf3   :  { %611 = vst [vmem:[%s1252_s2 + $0xa0] sm:$0xff] %v300_v52  ;;  %233 = vmatmul.f32.gmra.mxu0 %v63_v48  ;;  %346 = vmatmul.f32.gmra.mxu1 %v64_v49 }
  0xf4   :  { %v412_v53 = vpop.f32.mrf.mxu2 }
  0xf5   :  { %v525_v54 = vpop.f32.mrf.mxu3 }
  0xf6   :  { %v526_v55 = vadd.f32 %v525_v54, %v412_v53 }
  0xf8   :  { %612 = vst [vmem:[%s1252_s2 + $0xa8] sm:$0xff] %v526_v55  ;;  %v189_v58 = vpop.f32.mrf.mxu0  ;;  %v302_v59 = vpop.f32.mrf.mxu1 }
  0xf9   :  { %462 = vmatmul.f32.gmra.mxu2 %v65_v56  ;;  %v303_v60 = vadd.f32 %v302_v59, %v189_v58 }
  0xfa   :  { %575 = vmatmul.f32.gmra.mxu3 %v66_v57 }
  0xfb   :  { %613 = vst [vmem:[%s1252_s2 + $0xb0] sm:$0xff] %v303_v60  ;;  %236 = vmatmul.f32.gmra.mxu0 %v65_v56  ;;  %349 = vmatmul.f32.gmra.mxu1 %v66_v57 }
  0xfc   :  { %v415_v61 = vpop.f32.mrf.mxu2 }
  0xfd   :  { %v528_v62 = vpop.f32.mrf.mxu3 }
  0xfe   :  { %v529_v63 = vadd.f32 %v528_v62, %v415_v61 }
 0x100   :  { %614 = vst [vmem:[%s1252_s2 + $0xb8] sm:$0xff] %v529_v63  ;;  %v192_v2 = vpop.f32.mrf.mxu0  ;;  %v305_v3 = vpop.f32.mrf.mxu1 }
 0x101   :  { %465 = vmatmul.f32.gmra.mxu2 %v67_v0  ;;  %v306_v4 = vadd.f32 %v305_v3, %v192_v2 }
 0x102   :  { %578 = vmatmul.f32.gmra.mxu3 %v68_v1 }
 0x103   :  { %615 = vst [vmem:[%s1252_s2 + $0xc0] sm:$0xff] %v306_v4  ;;  %239 = vmatmul.f32.gmra.mxu0 %v67_v0  ;;  %352 = vmatmul.f32.gmra.mxu1 %v68_v1 }
 0x104   :  { %v418_v5 = vpop.f32.mrf.mxu2 }
 0x105   :  { %v531_v6 = vpop.f32.mrf.mxu3 }
 0x106   :  { %v532_v7 = vadd.f32 %v531_v6, %v418_v5 }
 0x108   :  { %616 = vst [vmem:[%s1252_s2 + $0xc8] sm:$0xff] %v532_v7  ;;  %v195_v10 = vpop.f32.mrf.mxu0  ;;  %v308_v11 = vpop.f32.mrf.mxu1 }
 0x109   :  { %468 = vmatmul.f32.gmra.mxu2 %v69_v8  ;;  %v309_v12 = vadd.f32 %v308_v11, %v195_v10 }
 0x10a   :  { %581 = vmatmul.f32.gmra.mxu3 %v70_v9 }
 0x10b   :  { %617 = vst [vmem:[%s1252_s2 + $0xd0] sm:$0xff] %v309_v12  ;;  %242 = vmatmul.f32.gmra.mxu0 %v69_v8  ;;  %355 = vmatmul.f32.gmra.mxu1 %v70_v9 }
 0x10c   :  { %v421_v13 = vpop.f32.mrf.mxu2 }
 0x10d   :  { %v534_v14 = vpop.f32.mrf.mxu3 }
 0x10e   :  { %v535_v15 = vadd.f32 %v534_v14, %v421_v13 }
 0x110   :  { %618 = vst [vmem:[%s1252_s2 + $0xd8] sm:$0xff] %v535_v15  ;;  %v198_v18 = vpop.f32.mrf.mxu0  ;;  %v311_v19 = vpop.f32.mrf.mxu1 }
 0x111   :  { %471 = vmatmul.f32.gmra.mxu2 %v71_v16  ;;  %v312_v20 = vadd.f32 %v311_v19, %v198_v18 }
 0x112   :  { %584 = vmatmul.f32.gmra.mxu3 %v72_v17 }
 0x113   :  { %619 = vst [vmem:[%s1252_s2 + $0xe0] sm:$0xff] %v312_v20  ;;  %245 = vmatmul.f32.gmra.mxu0 %v71_v16  ;;  %358 = vmatmul.f32.gmra.mxu1 %v72_v17 }
 0x114   :  { %v424_v21 = vpop.f32.mrf.mxu2 }
 0x115   :  { %v537_v22 = vpop.f32.mrf.mxu3 }
 0x116   :  { %v538_v23 = vadd.f32 %v537_v22, %v424_v21 }
 0x118   :  { %620 = vst [vmem:[%s1252_s2 + $0xe8] sm:$0xff] %v538_v23  ;;  %v201_v26 = vpop.f32.mrf.mxu0  ;;  %v314_v27 = vpop.f32.mrf.mxu1 }
 0x119   :  { %474 = vmatmul.f32.gmra.mxu2 %v73_v24  ;;  %v315_v28 = vadd.f32 %v314_v27, %v201_v26 }
 0x11a   :  { %587 = vmatmul.f32.gmra.mxu3 %v74_v25 }
 0x11b   :  { %621 = vst [vmem:[%s1252_s2 + $0xf0] sm:$0xff] %v315_v28  ;;  %248 = vmatmul.f32.gmra.mxu0 %v73_v24  ;;  %361 = vmatmul.f32.gmra.mxu1 %v74_v25 }
 0x11c   :  { %v427_v29 = vpop.f32.mrf.mxu2 }
 0x11d   :  { %v540_v30 = vpop.f32.mrf.mxu3 }
 0x11e   :  { %v541_v31 = vadd.f32 %v540_v30, %v427_v29 }
 0x120   :  { %622 = vst [vmem:[%s1252_s2 + $0xf8] sm:$0xff] %v541_v31  ;;  %v204_v32 = vpop.f32.mrf.mxu0  ;;  %v317_v33 = vpop.f32.mrf.mxu1 }
 0x121   :  { %v318_v34 = vadd.f32 %v317_v33, %v204_v32 }
 0x123   :  { %623 = vst [vmem:[%s1252_s2 + $0x100] sm:$0xff] %v318_v34 }
 0x124   :  { %v430_v35 = vpop.f32.mrf.mxu2 }
 0x125   :  { %v543_v36 = vpop.f32.mrf.mxu3 }
 0x126   :  { %v544_v37 = vadd.f32 %v543_v36, %v430_v35 }
 0x128   :  { %624 = vst [vmem:[%s1252_s2 + $0x108] sm:$0xff] %v544_v37  ;;  %v207_v38 = vpop.f32.mrf.mxu0  ;;  %v320_v39 = vpop.f32.mrf.mxu1 }
 0x129   :  { %v321_v40 = vadd.f32 %v320_v39, %v207_v38 }
 0x12b   :  { %625 = vst [vmem:[%s1252_s2 + $0x110] sm:$0xff] %v321_v40 }
 0x12c   :  { %v433_v41 = vpop.f32.mrf.mxu2 }
 0x12d   :  { %v546_v42 = vpop.f32.mrf.mxu3 }
 0x12e   :  { %v547_v43 = vadd.f32 %v546_v42, %v433_v41 }
 0x130   :  { %626 = vst [vmem:[%s1252_s2 + $0x118] sm:$0xff] %v547_v43  ;;  %v210_v44 = vpop.f32.mrf.mxu0  ;;  %v323_v45 = vpop.f32.mrf.mxu1 }
 0x131   :  { %v324_v46 = vadd.f32 %v323_v45, %v210_v44 }
 0x133   :  { %627 = vst [vmem:[%s1252_s2 + $0x120] sm:$0xff] %v324_v46 }
 0x134   :  { %v436_v47 = vpop.f32.mrf.mxu2 }
 0x135   :  { %v549_v48 = vpop.f32.mrf.mxu3 }
 0x136   :  { %v550_v49 = vadd.f32 %v549_v48, %v436_v47 }
 0x138   :  { %628 = vst [vmem:[%s1252_s2 + $0x128] sm:$0xff] %v550_v49  ;;  %v213_v50 = vpop.f32.mrf.mxu0  ;;  %v326_v51 = vpop.f32.mrf.mxu1 }
 0x139   :  { %v327_v52 = vadd.f32 %v326_v51, %v213_v50 }
 0x13b   :  { %629 = vst [vmem:[%s1252_s2 + $0x130] sm:$0xff] %v327_v52 }
 0x13c   :  { %v439_v53 = vpop.f32.mrf.mxu2 }
 0x13d   :  { %v552_v54 = vpop.f32.mrf.mxu3 }
 0x13e   :  { %v553_v55 = vadd.f32 %v552_v54, %v439_v53 }
 0x140   :  { %630 = vst [vmem:[%s1252_s2 + $0x138] sm:$0xff] %v553_v55  ;;  %v216_v56 = vpop.f32.mrf.mxu0  ;;  %v329_v57 = vpop.f32.mrf.mxu1 }
 0x141   :  { %v330_v58 = vadd.f32 %v329_v57, %v216_v56 }
 0x143   :  { %631 = vst [vmem:[%s1252_s2 + $0x140] sm:$0xff] %v330_v58 }
 0x144   :  { %v442_v59 = vpop.f32.mrf.mxu2 }
 0x145   :  { %v555_v60 = vpop.f32.mrf.mxu3 }
 0x146   :  { %v556_v61 = vadd.f32 %v555_v60, %v442_v59 }
 0x148   :  { %632 = vst [vmem:[%s1252_s2 + $0x148] sm:$0xff] %v556_v61  ;;  %v219_v62 = vpop.f32.mrf.mxu0  ;;  %v332_v63 = vpop.f32.mrf.mxu1 }
 0x149   :  { %v333_v0 = vadd.f32 %v332_v63, %v219_v62 }
 0x14b   :  { %633 = vst [vmem:[%s1252_s2 + $0x150] sm:$0xff] %v333_v0 }
 0x14c   :  { %v445_v1 = vpop.f32.mrf.mxu2 }
 0x14d   :  { %v558_v2 = vpop.f32.mrf.mxu3 }
 0x14e   :  { %v559_v3 = vadd.f32 %v558_v2, %v445_v1 }
 0x150   :  { %634 = vst [vmem:[%s1252_s2 + $0x158] sm:$0xff] %v559_v3  ;;  %v222_v4 = vpop.f32.mrf.mxu0  ;;  %v335_v5 = vpop.f32.mrf.mxu1 }
 0x151   :  { %v336_v6 = vadd.f32 %v335_v5, %v222_v4 }
 0x153   :  { %635 = vst [vmem:[%s1252_s2 + $0x160] sm:$0xff] %v336_v6 }
 0x154   :  { %v448_v7 = vpop.f32.mrf.mxu2 }
 0x155   :  { %v561_v8 = vpop.f32.mrf.mxu3 }
 0x156   :  { %v562_v9 = vadd.f32 %v561_v8, %v448_v7 }
 0x158   :  { %636 = vst [vmem:[%s1252_s2 + $0x168] sm:$0xff] %v562_v9  ;;  %v225_v10 = vpop.f32.mrf.mxu0  ;;  %v338_v11 = vpop.f32.mrf.mxu1 }
 0x159   :  { %v339_v12 = vadd.f32 %v338_v11, %v225_v10 }
 0x15b   :  { %637 = vst [vmem:[%s1252_s2 + $0x170] sm:$0xff] %v339_v12 }
 0x15c   :  { %v451_v13 = vpop.f32.mrf.mxu2 }
 0x15d   :  { %v564_v14 = vpop.f32.mrf.mxu3 }
 0x15e   :  { %v565_v15 = vadd.f32 %v564_v14, %v451_v13 }
 0x160   :  { %638 = vst [vmem:[%s1252_s2 + $0x178] sm:$0xff] %v565_v15  ;;  %v228_v16 = vpop.f32.mrf.mxu0  ;;  %v341_v17 = vpop.f32.mrf.mxu1 }
 0x161   :  { %v342_v18 = vadd.f32 %v341_v17, %v228_v16 }
 0x163   :  { %639 = vst [vmem:[%s1252_s2 + $0x180] sm:$0xff] %v342_v18 }
 0x164   :  { %v454_v19 = vpop.f32.mrf.mxu2 }
 0x165   :  { %v567_v20 = vpop.f32.mrf.mxu3 }
 0x166   :  { %v568_v21 = vadd.f32 %v567_v20, %v454_v19 }
 0x168   :  { %640 = vst [vmem:[%s1252_s2 + $0x188] sm:$0xff] %v568_v21  ;;  %v231_v22 = vpop.f32.mrf.mxu0  ;;  %v344_v23 = vpop.f32.mrf.mxu1 }
 0x169   :  { %v345_v24 = vadd.f32 %v344_v23, %v231_v22 }
 0x16b   :  { %641 = vst [vmem:[%s1252_s2 + $0x190] sm:$0xff] %v345_v24 }
 0x16c   :  { %v457_v25 = vpop.f32.mrf.mxu2 }
 0x16d   :  { %v570_v26 = vpop.f32.mrf.mxu3 }
 0x16e   :  { %v571_v27 = vadd.f32 %v570_v26, %v457_v25 }
 0x170   :  { %642 = vst [vmem:[%s1252_s2 + $0x198] sm:$0xff] %v571_v27  ;;  %v234_v28 = vpop.f32.mrf.mxu0  ;;  %v347_v29 = vpop.f32.mrf.mxu1 }
 0x171   :  { %v348_v30 = vadd.f32 %v347_v29, %v234_v28 }
 0x173   :  { %643 = vst [vmem:[%s1252_s2 + $0x1a0] sm:$0xff] %v348_v30 }
 0x174   :  { %v460_v31 = vpop.f32.mrf.mxu2 }
 0x175   :  { %v573_v32 = vpop.f32.mrf.mxu3 }
 0x176   :  { %v574_v33 = vadd.f32 %v573_v32, %v460_v31 }
 0x178   :  { %644 = vst [vmem:[%s1252_s2 + $0x1a8] sm:$0xff] %v574_v33  ;;  %v237_v34 = vpop.f32.mrf.mxu0  ;;  %v350_v35 = vpop.f32.mrf.mxu1 }
 0x179   :  { %v351_v36 = vadd.f32 %v350_v35, %v237_v34 }
 0x17b   :  { %645 = vst [vmem:[%s1252_s2 + $0x1b0] sm:$0xff] %v351_v36 }
 0x17c   :  { %v463_v37 = vpop.f32.mrf.mxu2 }
 0x17d   :  { %v576_v38 = vpop.f32.mrf.mxu3 }
 0x17e   :  { %v577_v39 = vadd.f32 %v576_v38, %v463_v37 }
 0x180   :  { %646 = vst [vmem:[%s1252_s2 + $0x1b8] sm:$0xff] %v577_v39  ;;  %v240_v40 = vpop.f32.mrf.mxu0  ;;  %v353_v41 = vpop.f32.mrf.mxu1 }
 0x181   :  { %v354_v42 = vadd.f32 %v353_v41, %v240_v40 }
 0x183   :  { %647 = vst [vmem:[%s1252_s2 + $0x1c0] sm:$0xff] %v354_v42 }
 0x184   :  { %v466_v43 = vpop.f32.mrf.mxu2 }
 0x185   :  { %v579_v44 = vpop.f32.mrf.mxu3 }
 0x186   :  { %v580_v45 = vadd.f32 %v579_v44, %v466_v43 }
 0x188   :  { %648 = vst [vmem:[%s1252_s2 + $0x1c8] sm:$0xff] %v580_v45  ;;  %v243_v46 = vpop.f32.mrf.mxu0  ;;  %v356_v47 = vpop.f32.mrf.mxu1 }
 0x189   :  { %v357_v48 = vadd.f32 %v356_v47, %v243_v46 }
 0x18b   :  { %649 = vst [vmem:[%s1252_s2 + $0x1d0] sm:$0xff] %v357_v48 }
 0x18c   :  { %v469_v49 = vpop.f32.mrf.mxu2 }
 0x18d   :  { %v582_v50 = vpop.f32.mrf.mxu3 }
 0x18e   :  { %v583_v51 = vadd.f32 %v582_v50, %v469_v49 }
 0x190   :  { %650 = vst [vmem:[%s1252_s2 + $0x1d8] sm:$0xff] %v583_v51  ;;  %v246_v52 = vpop.f32.mrf.mxu0  ;;  %v359_v53 = vpop.f32.mrf.mxu1 }
 0x191   :  { %v360_v54 = vadd.f32 %v359_v53, %v246_v52 }
 0x193   :  { %651 = vst [vmem:[%s1252_s2 + $0x1e0] sm:$0xff] %v360_v54 }
 0x194   :  { %v472_v55 = vpop.f32.mrf.mxu2 }
 0x195   :  { %v585_v56 = vpop.f32.mrf.mxu3 }
 0x196   :  { %v586_v57 = vadd.f32 %v585_v56, %v472_v55 }
 0x198   :  { %652 = vst [vmem:[%s1252_s2 + $0x1e8] sm:$0xff] %v586_v57  ;;  %v249_v58 = vpop.f32.mrf.mxu0  ;;  %v362_v59 = vpop.f32.mrf.mxu1 }
 0x199   :  { %v363_v60 = vadd.f32 %v362_v59, %v249_v58 }
 0x19b   :  { %653 = vst [vmem:[%s1252_s2 + $0x1f0] sm:$0xff] %v363_v60 }
 0x19c   :  { %v475_v61 = vpop.f32.mrf.mxu2 }
 0x19d   :  { %v588_v62 = vpop.f32.mrf.mxu3 }
 0x19e   :  { %v589_v63 = vadd.f32 %v588_v62, %v475_v61 }
 0x1a0   :  { %654 = vst [vmem:[%s1252_s2 + $0x1f8] sm:$0xff] %v589_v63 }

// kernel: weighted_permute_mlp_pallas.9
= control target key start
LH: loop header
LB: loop body
LE: loop exit
PB: predicated region body
PF: predicated region fallthrough
CT: control target
= control target key end

     0   :  { %s661_s12 = smov 0   ;;  %s663_s13 = smov 0   ;;  %s809_s0 = inlined_call_operand.vmem [shape: f32[2,256,128], index: 0, kind: input, shape index: {}]   ;;  %s810_s1 = inlined_call_operand.vmem [shape: f32[2,256,128], index: 1, kind: input, shape index: {}]   ;;  %s811_s2 = inlined_call_operand.vmem [shape: f32[2,256,128], index: 2, kind: input, shape index: {}]   ;;  %s812_s3 = inlined_call_operand.vmem [shape: f32[2,1,128], index: 3, kind: output, shape index: {}]  }
   0x1   :  { %s665_s14 = smov 0  }
   0x2 LB: > { %s25_s15 = sadd.s32 1, %s634_s13  ;;  %p579_p0 = scmp.ge.s32.totalorder %s638_s14, 1  ;;  %s638_s14 = sphi %s665_s14, %s13_s14   ;;  %s634_s13 = sphi %s663_s13, %s814_s13   ;;  %s630_s12 = sphi %s661_s12, %s813_s12  }
   0x3   : > { %p27_p1 = scmp.ge.s32.totalorder %s25_s15, 2  ;;  %p190_p2 = scmp.lt.s32.totalorder %s638_s14, 3 }
   0x5   : > { %s816_s15 = smov (%p27_p1, %s25_s15), 0  ;;  %p191_p3 = pnand %p579_p0, %p190_p2 }
   0x6   : > { %p235_p4 = scmp.lt.s32.totalorder (!%p191_p3), %s630_s12, 1 }
   0x7   : > { %194 = sbr.rel (%p191_p3) target bundleno = 109 (0x6d), region = 32 }
   0xc   : > { %s818_s12 = smov (!%p235_p4, %s630_s12), 1  ;;  %v640_v0 = vmov 0.0  }
   0xd   : > { %s682_s18 = scalar_lea.vmem %s812_s3, %s818_s12  ;;  %s588_s19 = sshll.u32 %s818_s12, 8 }
   0xe   : > { %271 = vst [vmem:[%s682_s18] sm:$0x1] %v640_v0  ;;  %s688_s22 = scalar_lea.vmem %s809_s0, %s588_s19  ;;  %s693_s25 = scalar_lea.vmem %s810_s1, %s588_s19 }
   0xf   : > { %v272_v1 = vld [vmem:[%s688_s22] sm:$0xff]  ;;  %v273_v2 = vld [vmem:[%s688_s22 + $0x8] sm:$0xff]  ;;  %v274_v5 = vld [vmem:[%s688_s22 + $0x10] sm:$0xff]  ;;  %s706_s28 = scalar_lea.vmem %s811_s2, %s588_s19 }
  0x10   : > { %v304_v3 = vld [vmem:[%s693_s25] sm:$0xff]  ;;  %v305_v4 = vld [vmem:[%s693_s25 + $0x8] sm:$0xff]  ;;  %v306_v6 = vld [vmem:[%s693_s25 + $0x10] sm:$0xff] }
  0x11   : > { %v275_v7 = vld [vmem:[%s688_s22 + $0x18] sm:$0xff]  ;;  %v336_v9 = vadd.f32 %v304_v3, %v272_v1  ;;  %v337_v10 = vadd.f32 %v305_v4, %v273_v2  ;;  %v276_v11 = vld [vmem:[%s688_s22 + $0x20] sm:$0xff]  ;;  %v338_v13 = vadd.f32 %v306_v6, %v274_v5  ;;  %v277_v14 = vld [vmem:[%s688_s22 + $0x28] sm:$0xff] }
  0x12   : > { %v307_v8 = vld [vmem:[%s693_s25 + $0x18] sm:$0xff]  ;;  %v308_v12 = vld [vmem:[%s693_s25 + $0x20] sm:$0xff]  ;;  %v309_v16 = vld [vmem:[%s693_s25 + $0x28] sm:$0xff] }
  0x13   : > { %v339_v15 = vadd.f32 %v307_v8, %v275_v7  ;;  %v368_v17 = vld [vmem:[%s706_s28] sm:$0xff]  ;;  %v369_v18 = vld [vmem:[%s706_s28 + $0x8] sm:$0xff]  ;;  %v340_v19 = vadd.f32 %v308_v12, %v276_v11  ;;  %v370_v20 = vld [vmem:[%s706_s28 + $0x10] sm:$0xff]  ;;  %v341_v28 = vadd.f32 %v309_v16, %v277_v14 }
  0x14   : > { %v371_v21 = vld [vmem:[%s706_s28 + $0x18] sm:$0xff]  ;;  %v400_v22 = vadd.f32 %v368_v17, %v336_v9  ;;  %v401_v23 = vadd.f32 %v369_v18, %v337_v10  ;;  %v278_v24 = vld [vmem:[%s688_s22 + $0x30] sm:$0xff]  ;;  %v372_v26 = vld [vmem:[%s706_s28 + $0x20] sm:$0xff]  ;;  %v402_v27 = vadd.f32 %v370_v20, %v338_v13 }
  0x15   : > { %v310_v25 = vld [vmem:[%s693_s25 + $0x30] sm:$0xff]  ;;  %v403_v29 = vadd.f32 %v371_v21, %v339_v15  ;;  %v279_v31 = vld [vmem:[%s688_s22 + $0x38] sm:$0xff]  ;;  %v373_v33 = vld [vmem:[%s706_s28 + $0x28] sm:$0xff]  ;;  %v404_v35 = vadd.f32 %v372_v26, %v340_v19 }
  0x16   : > { %v433_v30 = vadd.f32 %v401_v23, %v400_v22  ;;  %v311_v32 = vld [vmem:[%s693_s25 + $0x38] sm:$0xff]  ;;  %v342_v34 = vadd.f32 %v310_v25, %v278_v24  ;;  %v280_v37 = vld [vmem:[%s688_s22 + $0x40] sm:$0xff]  ;;  %v374_v39 = vld [vmem:[%s706_s28 + $0x30] sm:$0xff]  ;;  %v405_v41 = vadd.f32 %v373_v33, %v341_v28 }
  0x17   : > { %v312_v38 = vld [vmem:[%s693_s25 + $0x40] sm:$0xff]  ;;  %v343_v40 = vadd.f32 %v311_v32, %v279_v31  ;;  %v281_v43 = vld [vmem:[%s688_s22 + $0x48] sm:$0xff]  ;;  %v375_v45 = vld [vmem:[%s706_s28 + $0x38] sm:$0xff] }
  0x18   : > { %v434_v36 = vadd.f32 %v433_v30, %v402_v27  ;;  %v313_v44 = vld [vmem:[%s693_s25 + $0x48] sm:$0xff]  ;;  %v344_v46 = vadd.f32 %v312_v38, %v280_v37  ;;  %v406_v47 = vadd.f32 %v374_v39, %v342_v34  ;;  %v282_v49 = vld [vmem:[%s688_s22 + $0x50] sm:$0xff]  ;;  %v376_v51 = vld [vmem:[%s706_s28 + $0x40] sm:$0xff] }
  0x19   : > { %v314_v50 = vld [vmem:[%s693_s25 + $0x50] sm:$0xff]  ;;  %v345_v52 = vadd.f32 %v313_v44, %v281_v43  ;;  %v407_v53 = vadd.f32 %v375_v45, %v343_v40  ;;  %v283_v55 = vld [vmem:[%s688_s22 + $0x58] sm:$0xff]  ;;  %v377_v57 = vld [vmem:[%s706_s28 + $0x48] sm:$0xff] }
  0x1a   : > { %v435_v42 = vadd.f32 %v434_v36, %v403_v29  ;;  %v315_v56 = vld [vmem:[%s693_s25 + $0x58] sm:$0xff]  ;;  %v346_v58 = vadd.f32 %v314_v50, %v282_v49  ;;  %v408_v59 = vadd.f32 %v376_v51, %v344_v46  ;;  %v284_v61 = vld [vmem:[%s688_s22 + $0x60] sm:$0xff]  ;;  %v378_v63 = vld [vmem:[%s706_s28 + $0x50] sm:$0xff] }
  0x1b   : > { %v316_v62 = vld [vmem:[%s693_s25 + $0x60] sm:$0xff]  ;;  %v347_v0 = vadd.f32 %v315_v56, %v283_v55  ;;  %v409_v1 = vadd.f32 %v377_v57, %v345_v52  ;;  %v285_v3 = vld [vmem:[%s688_s22 + $0x68] sm:$0xff]  ;;  %v379_v5 = vld [vmem:[%s706_s28 + $0x58] sm:$0xff] }
  0x1c   : > { %v436_v48 = vadd.f32 %v435_v42, %v404_v35  ;;  %v317_v4 = vld [vmem:[%s693_s25 + $0x68] sm:$0xff]  ;;  %v348_v6 = vadd.f32 %v316_v62, %v284_v61  ;;  %v410_v7 = vadd.f32 %v378_v63, %v346_v58  ;;  %v286_v9 = vld [vmem:[%s688_s22 + $0x70] sm:$0xff]  ;;  %v380_v11 = vld [vmem:[%s706_s28 + $0x60] sm:$0xff] }
  0x1d   : > { %v318_v10 = vld [vmem:[%s693_s25 + $0x70] sm:$0xff]  ;;  %v349_v12 = vadd.f32 %v317_v4, %v285_v3  ;;  %v411_v13 = vadd.f32 %v379_v5, %v347_v0  ;;  %v287_v15 = vld [vmem:[%s688_s22 + $0x78] sm:$0xff]  ;;  %v381_v17 = vld [vmem:[%s706_s28 + $0x68] sm:$0xff] }
  0x1e   : > { %v437_v54 = vadd.f32 %v436_v48, %v405_v41  ;;  %v319_v16 = vld [vmem:[%s693_s25 + $0x78] sm:$0xff]  ;;  %v350_v18 = vadd.f32 %v318_v10, %v286_v9  ;;  %v412_v19 = vadd.f32 %v380_v11, %v348_v6  ;;  %v288_v21 = vld [vmem:[%s688_s22 + $0x80] sm:$0xff]  ;;  %v382_v23 = vld [vmem:[%s706_s28 + $0x70] sm:$0xff] }
  0x1f   : > { %v320_v22 = vld [vmem:[%s693_s25 + $0x80] sm:$0xff]  ;;  %v351_v24 = vadd.f32 %v319_v16, %v287_v15  ;;  %v413_v25 = vadd.f32 %v381_v17, %v349_v12  ;;  %v289_v27 = vld [vmem:[%s688_s22 + $0x88] sm:$0xff]  ;;  %v383_v29 = vld [vmem:[%s706_s28 + $0x78] sm:$0xff] }
  0x20   : > { %v438_v60 = vadd.f32 %v437_v54, %v406_v47  ;;  %v321_v28 = vld [vmem:[%s693_s25 + $0x88] sm:$0xff]  ;;  %v352_v30 = vadd.f32 %v320_v22, %v288_v21  ;;  %v414_v31 = vadd.f32 %v382_v23, %v350_v18  ;;  %v290_v33 = vld [vmem:[%s688_s22 + $0x90] sm:$0xff]  ;;  %v384_v35 = vld [vmem:[%s706_s28 + $0x80] sm:$0xff] }
  0x21   : > { %v322_v34 = vld [vmem:[%s693_s25 + $0x90] sm:$0xff]  ;;  %v353_v36 = vadd.f32 %v321_v28, %v289_v27  ;;  %v415_v37 = vadd.f32 %v383_v29, %v351_v24  ;;  %v291_v39 = vld [vmem:[%s688_s22 + $0x98] sm:$0xff]  ;;  %v385_v41 = vld [vmem:[%s706_s28 + $0x88] sm:$0xff] }
  0x22   : > { %v439_v2 = vadd.f32 %v438_v60, %v407_v53  ;;  %v323_v40 = vld [vmem:[%s693_s25 + $0x98] sm:$0xff]  ;;  %v354_v42 = vadd.f32 %v322_v34, %v290_v33  ;;  %v416_v43 = vadd.f32 %v384_v35, %v352_v30  ;;  %v292_v45 = vld [vmem:[%s688_s22 + $0xa0] sm:$0xff]  ;;  %v386_v47 = vld [vmem:[%s706_s28 + $0x90] sm:$0xff] }
  0x23   : > { %v324_v46 = vld [vmem:[%s693_s25 + $0xa0] sm:$0xff]  ;;  %v355_v48 = vadd.f32 %v323_v40, %v291_v39  ;;  %v417_v49 = vadd.f32 %v385_v41, %v353_v36  ;;  %v293_v51 = vld [vmem:[%s688_s22 + $0xa8] sm:$0xff]  ;;  %v387_v53 = vld [vmem:[%s706_s28 + $0x98] sm:$0xff] }
  0x24   : > { %v440_v8 = vadd.f32 %v439_v2, %v408_v59  ;;  %v325_v52 = vld [vmem:[%s693_s25 + $0xa8] sm:$0xff]  ;;  %v356_v54 = vadd.f32 %v324_v46, %v292_v45  ;;  %v418_v55 = vadd.f32 %v386_v47, %v354_v42  ;;  %v294_v57 = vld [vmem:[%s688_s22 + $0xb0] sm:$0xff]  ;;  %v388_v59 = vld [vmem:[%s706_s28 + $0xa0] sm:$0xff] }
  0x25   : > { %v326_v58 = vld [vmem:[%s693_s25 + $0xb0] sm:$0xff]  ;;  %v357_v60 = vadd.f32 %v325_v52, %v293_v51  ;;  %v419_v61 = vadd.f32 %v387_v53, %v355_v48  ;;  %v295_v63 = vld [vmem:[%s688_s22 + $0xb8] sm:$0xff]  ;;  %v296_v5 = vld [vmem:[%s688_s22 + $0xc0] sm:$0xff] }
  0x26   : > { %v441_v14 = vadd.f32 %v440_v8, %v409_v1  ;;  %v327_v0 = vld [vmem:[%s693_s25 + $0xb8] sm:$0xff]  ;;  %v389_v1 = vld [vmem:[%s706_s28 + $0xa8] sm:$0xff]  ;;  %v358_v2 = vadd.f32 %v326_v58, %v294_v57  ;;  %v420_v3 = vadd.f32 %v388_v59, %v356_v54  ;;  %v328_v6 = vld [vmem:[%s693_s25 + $0xc0] sm:$0xff] }
  0x27   : > { %v359_v8 = vadd.f32 %v327_v0, %v295_v63  ;;  %v421_v9 = vadd.f32 %v389_v1, %v357_v60  ;;  %v297_v11 = vld [vmem:[%s688_s22 + $0xc8] sm:$0xff]  ;;  %v298_v17 = vld [vmem:[%s688_s22 + $0xd0] sm:$0xff]  ;;  %v299_v23 = vld [vmem:[%s688_s22 + $0xd8] sm:$0xff] }
  0x28   : > { %v442_v20 = vadd.f32 %v441_v14, %v410_v7  ;;  %v390_v7 = vld [vmem:[%s706_s28 + $0xb0] sm:$0xff]  ;;  %v329_v12 = vld [vmem:[%s693_s25 + $0xc8] sm:$0xff]  ;;  %v360_v14 = vadd.f32 %v328_v6, %v296_v5  ;;  %v331_v24 = vld [vmem:[%s693_s25 + $0xd8] sm:$0xff] }
  0x29   : > { %v422_v15 = vadd.f32 %v390_v7, %v358_v2  ;;  %v330_v18 = vld [vmem:[%s693_s25 + $0xd0] sm:$0xff]  ;;  %v300_v29 = vld [vmem:[%s688_s22 + $0xe0] sm:$0xff]  ;;  %v301_v35 = vld [vmem:[%s688_s22 + $0xe8] sm:$0xff] }
  0x2a   : > { %v443_v26 = vadd.f32 %v442_v20, %v411_v13  ;;  %v391_v13 = vld [vmem:[%s706_s28 + $0xb8] sm:$0xff]  ;;  %v361_v20 = vadd.f32 %v329_v12, %v297_v11  ;;  %v332_v30 = vld [vmem:[%s693_s25 + $0xe0] sm:$0xff]  ;;  %v333_v36 = vld [vmem:[%s693_s25 + $0xe8] sm:$0xff] }
  0x2b   : > { %v423_v21 = vadd.f32 %v391_v13, %v359_v8  ;;  %v302_v41 = vld [vmem:[%s688_s22 + $0xf0] sm:$0xff]  ;;  %v303_v47 = vld [vmem:[%s688_s22 + $0xf8] sm:$0xff]  ;;  %v432_v5 = vld [vmem:[%s682_s18] sm:$0x1] }
  0x2c   : > { %v444_v32 = vadd.f32 %v443_v26, %v412_v19  ;;  %v392_v19 = vld [vmem:[%s706_s28 + $0xc0] sm:$0xff]  ;;  %v362_v26 = vadd.f32 %v330_v18, %v298_v17  ;;  %v334_v42 = vld [vmem:[%s693_s25 + $0xf0] sm:$0xff]  ;;  %v335_v48 = vld [vmem:[%s693_s25 + $0xf8] sm:$0xff] }
  0x2d   : > { %v424_v27 = vadd.f32 %v392_v19, %v360_v14  ;;  %v398_v53 = vld [vmem:[%s706_s28 + $0xf0] sm:$0xff]  ;;  %v367_v54 = vadd.f32 %v335_v48, %v303_v47  ;;  %v399_v57 = vld [vmem:[%s706_s28 + $0xf8] sm:$0xff] }
  0x2e   : > { %v445_v38 = vadd.f32 %v444_v32, %v413_v25  ;;  %v393_v25 = vld [vmem:[%s706_s28 + $0xc8] sm:$0xff]  ;;  %v363_v32 = vadd.f32 %v331_v24, %v299_v23 }
  0x2f   : > { %v425_v33 = vadd.f32 %v393_v25, %v361_v20  ;;  %v431_v60 = vadd.f32 %v399_v57, %v367_v54 }
  0x30   : > { %v446_v44 = vadd.f32 %v445_v38, %v414_v31  ;;  %v394_v31 = vld [vmem:[%s706_s28 + $0xd0] sm:$0xff]  ;;  %v364_v38 = vadd.f32 %v332_v30, %v300_v29 }
  0x31   : > { %v426_v39 = vadd.f32 %v394_v31, %v362_v26 }
  0x32   : > { %v447_v50 = vadd.f32 %v446_v44, %v415_v37  ;;  %v395_v37 = vld [vmem:[%s706_s28 + $0xd8] sm:$0xff]  ;;  %v365_v44 = vadd.f32 %v333_v36, %v301_v35 }
  0x33   : > { %v427_v45 = vadd.f32 %v395_v37, %v363_v32 }
  0x34   : > { %v448_v56 = vadd.f32 %v447_v50, %v416_v43  ;;  %v396_v43 = vld [vmem:[%s706_s28 + $0xe0] sm:$0xff]  ;;  %v366_v50 = vadd.f32 %v334_v42, %v302_v41 }
  0x35   : > { %v428_v51 = vadd.f32 %v396_v43, %v364_v38 }
  0x36   : > { %v449_v62 = vadd.f32 %v448_v56, %v417_v49  ;;  %v397_v49 = vld [vmem:[%s706_s28 + $0xe8] sm:$0xff]  ;;  %v430_v58 = vadd.f32 %v398_v53, %v366_v50 }
  0x38   : > { %v450_v4 = vadd.f32 %v449_v62, %v418_v55  ;;  %v429_v55 = vadd.f32 %v397_v49, %v365_v44 }
  0x3a   : > { %v451_v10 = vadd.f32 %v450_v4, %v419_v61 }
  0x3c   : > { %v452_v16 = vadd.f32 %v451_v10, %v420_v3 }
  0x3e   : > { %v453_v22 = vadd.f32 %v452_v16, %v421_v9 }
  0x40   : > { %v454_v28 = vadd.f32 %v453_v22, %v422_v15 }
  0x42   : > { %v455_v34 = vadd.f32 %v454_v28, %v423_v21 }
  0x44   : > { %v456_v40 = vadd.f32 %v455_v34, %v424_v27 }
  0x46   : > { %v457_v46 = vadd.f32 %v456_v40, %v425_v33 }
  0x48   : > { %v458_v52 = vadd.f32 %v457_v46, %v426_v39 }
  0x4a   : > { %v459_v56 = vadd.f32 %v458_v52, %v427_v45 }
  0x4c   : > { %v460_v59 = vadd.f32 %v459_v56, %v428_v51 }
  0x4e   : > { %v461_v61 = vadd.f32 %v460_v59, %v429_v55 }
  0x50   : > { %v462_v62 = vadd.f32 %v461_v61, %v430_v58 }
  0x52   : > { %v463_v63 = vadd.f32 %v462_v62, %v431_v60 }
  0x54   : > { %v464_v0 = vrot.slane %v463_v63, 4 }
  0x56   : > { %v465_v1 = vadd.f32 %v464_v0, %v463_v63 }
  0x58   : > { %v466_v2 = vrot.slane %v465_v1, 2 }
  0x5a   : > { %v467_v3 = vadd.f32 %v466_v2, %v465_v1 }
  0x5c   : > { %v468_v4 = vrot.slane %v467_v3, 1 }
  0x5e   : > { %v469_v6 = vadd.f32 %v468_v4, %v467_v3 }
  0x60   : > { %v470_v7 = vadd.f32 %v469_v6, %v432_v5 }
  0x62   : > { %471 = vst [vmem:[%s682_s18] sm:$0x1] %v470_v7 }
  0x69   : > { %v475_v8 = vld [vmem:[%s682_s18] sm:$0x1] }
  0x6a   : > { %v476_v9 = vmul.f32 0.00390625, %v475_v8 }
  0x6c   : > { %477 = vst [vmem:[%s682_s18] sm:$0x1] %v476_v9 }
  0x6d PF: > { %s13_s14 = sadd.s32 1, %s638_s14   ;;  %s813_s12 = smov %s634_s13 }
  0x6e   : > { %p10_p5 = scmp.ge.s32.totalorder %s13_s14, 4   ;;  %s814_s13 = smov %s816_s15 }
  0x70   :  { %12 = sbr.rel (!%p10_p5) target bundleno = 2 (0x2), region = 76 }

// kernel: weighted_permute_mlp_pallas.10
= control target key start
LH: loop header
LB: loop body
LE: loop exit
PB: predicated region body
PF: predicated region fallthrough
CT: control target
= control target key end

     0   :  { %vm96_vm1 = vcmask 523264   ;;  %vm165_vm2 = vcmask 1041408   ;;  %vm167_vm3 = vcmask 1043456   ;;  %s341_s1 = inlined_call_operand.vmem [shape: f32[128,64], index: 1, kind: input, shape index: {}]   ;;  %s342_s3 = inlined_call_operand.vmem [shape: f32[64,384], index: 3, kind: input, shape index: {}]   ;;  %s343_s2 = inlined_call_operand.vmem [shape: f32[1,64], index: 2, kind: input, shape index: {}]   ;;  %s344_s0 = inlined_call_operand.vmem [shape: f32[2,128], index: 0, kind: input, shape index: {}]   ;;  %s345_s4 = inlined_call_operand.vmem [shape: f32[1,384], index: 4, kind: input, shape index: {}]   ;;  %s346_s5 = inlined_call_operand.vmem [shape: f32[2,384], index: 5, kind: output, shape index: {}]  }
   0x1   :  { %v36_v0 = vld [vmem:[%s341_s1 + $0x78] sm:$0xff]  ;;  %v35_v1 = vld [vmem:[%s341_s1 + $0x70] sm:$0xff]  ;;  %v34_v2 = vld [vmem:[%s341_s1 + $0x68] sm:$0xff] }
   0x2   :  { %41 = vmatpush.msra.mxu0 %v36_v0  ;;  %v33_v3 = vld [vmem:[%s341_s1 + $0x60] sm:$0xff]  ;;  %v32_v4 = vld [vmem:[%s341_s1 + $0x58] sm:$0xff]  ;;  %v85_v5 = vld [vmem:[%s342_s3 + $0xa8] sm:$0xff] }
   0x3   :  { %108 = vmatpush.msra.mxu1 %v85_v5  ;;  %v86_v6 = vld [vmem:[%s342_s3 + $0xb0] sm:$0xff]  ;;  %v87_v7 = vld [vmem:[%s342_s3 + $0xb8] sm:$0xff]  ;;  %v84_v10 = vld [vmem:[%s342_s3 + $0xa0] sm:$0xff] }
   0x4   :  { %42 = vmatpush.msra.mxu0 %v35_v1  ;;  %v82_v8 = vld [vmem:[%s342_s3 + $0x90] sm:$0xff]  ;;  %128 = vmatpush.msra.mxu2 %v86_v6  ;;  %v83_v9 = vld [vmem:[%s342_s3 + $0x98] sm:$0xff]  ;;  %v80_v13 = vld [vmem:[%s342_s3 + $0x80] sm:$0xff] }
   0x5   :  { %v79_v11 = vld [vmem:[%s342_s3 + $0x78] sm:$0xff]  ;;  %v31_v12 = vld [vmem:[%s341_s1 + $0x50] sm:$0xff]  ;;  %148 = vmatpush.msra.mxu3 %v87_v7  ;;  %109 = vmatpush.msra.mxu1 %v82_v8  ;;  %v81_v14 = vld [vmem:[%s342_s3 + $0x88] sm:$0xff] }
   0x6   :  { %43 = vmatpush.msra.mxu0 %v34_v2  ;;  %129 = vmatpush.msra.mxu2 %v83_v9  ;;  %v76_v15 = vld [vmem:[%s342_s3 + $0x60] sm:$0xff]  ;;  %v30_v16 = vld [vmem:[%s341_s1 + $0x48] sm:$0xff]  ;;  %v78_v18 = vld [vmem:[%s342_s3 + $0x70] sm:$0xff] }
   0x7   :  { %149 = vmatpush.msra.mxu3 %v84_v10  ;;  %110 = vmatpush.msra.mxu1 %v79_v11  ;;  %v77_v17 = vld [vmem:[%s342_s3 + $0x68] sm:$0xff]  ;;  %v29_v20 = vld [vmem:[%s341_s1 + $0x40] sm:$0xff]  ;;  %v74_v21 = vld [vmem:[%s342_s3 + $0x50] sm:$0xff] }
   0x8   :  { %44 = vmatpush.msra.mxu0 %v33_v3  ;;  %130 = vmatpush.msra.mxu2 %v80_v13  ;;  %v73_v19 = vld [vmem:[%s342_s3 + $0x48] sm:$0xff]  ;;  %v75_v22 = vld [vmem:[%s342_s3 + $0x58] sm:$0xff]  ;;  %v27_v24 = vld [vmem:[%s341_s1 + $0x30] sm:$0xff] }
   0x9   :  { %150 = vmatpush.msra.mxu3 %v81_v14  ;;  %111 = vmatpush.msra.mxu1 %v76_v15  ;;  %v28_v23 = vld [vmem:[%s341_s1 + $0x38] sm:$0xff]  ;;  %v26_v25 = vld [vmem:[%s341_s1 + $0x28] sm:$0xff]  ;;  %v25_v26 = vld [vmem:[%s341_s1 + $0x20] sm:$0xff] }
   0xa   :  { %45 = vmatpush.msra.mxu0 %v32_v4  ;;  %131 = vmatpush.msra.mxu2 %v77_v17  ;;  %v24_v27 = vld [vmem:[%s341_s1 + $0x18] sm:$0xff]  ;;  %v23_v28 = vld [vmem:[%s341_s1 + $0x10] sm:$0xff]  ;;  %v22_v29 = vld [vmem:[%s341_s1 + $0x8] sm:$0xff] }
   0xb   :  { %151 = vmatpush.msra.mxu3 %v78_v18  ;;  %112 = vmatpush.msra.mxu1 %v73_v19  ;;  %v21_v30 = vld [vmem:[%s341_s1] sm:$0xff]  ;;  %v70_v32 = vld [vmem:[%s342_s3 + $0x30] sm:$0xff]  ;;  %v71_v33 = vld [vmem:[%s342_s3 + $0x38] sm:$0xff] }
   0xc   :  { %46 = vmatpush.msra.mxu0 %v31_v12  ;;  %132 = vmatpush.msra.mxu2 %v74_v21  ;;  %v20_v31 = vld [vmem:[%s344_s0] sm:$0x3]  ;;  %v67_v35 = vld [vmem:[%s342_s3 + $0x18] sm:$0xff]  ;;  %v69_v37 = vld [vmem:[%s342_s3 + $0x28] sm:$0xff] }
   0xd   :  { %152 = vmatpush.msra.mxu3 %v75_v22  ;;  %v72_v34 = vld [vmem:[%s342_s3 + $0x40] sm:$0xff]  ;;  %113 = vmatpush.msra.mxu1 %v70_v32  ;;  %v65_v39 = vld [vmem:[%s342_s3 + $0x8] sm:$0xff]  ;;  %v66_v40 = vld [vmem:[%s342_s3 + $0x10] sm:$0xff] }
   0xe   :  { %47 = vmatpush.msra.mxu0 %v30_v16  ;;  %133 = vmatpush.msra.mxu2 %v71_v33  ;;  %v68_v36 = vld [vmem:[%s342_s3 + $0x20] sm:$0xff] }
   0xf   :  { %153 = vmatpush.msra.mxu3 %v72_v34  ;;  %114 = vmatpush.msra.mxu1 %v67_v35  ;;  %v64_v38 = vld [vmem:[%s342_s3] sm:$0xff] }
  0x10   :  { %48 = vmatpush.msra.mxu0 %v29_v20  ;;  %134 = vmatpush.msra.mxu2 %v68_v36  ;;  %v178_v41 = vld [vmem:[%s343_s2] ss:$0 sm:$0xff] }
  0x11   :  { %154 = vmatpush.msra.mxu3 %v69_v37  ;;  %115 = vmatpush.msra.mxu1 %v64_v38  ;;  %v88_v46 = vld [vmem:[%s345_s4] sm:$0x7] }
  0x12   :  { %49 = vmatpush.msra.mxu0 %v28_v23  ;;  %135 = vmatpush.msra.mxu2 %v65_v39  ;;  %v91_v47 = vperm.slane %v88_v46, 1  ;;  %v92_v48 = vperm.slane %v88_v46, 2  ;;  %v90_v49 = vperm.slane %v88_v46, 0 }
  0x13   :  { %155 = vmatpush.msra.mxu3 %v66_v40 }
  0x14   :  { %50 = vmatpush.msra.mxu0 %v27_v24 }
  0x16   :  { %51 = vmatpush.msra.mxu0 %v26_v25 }
  0x18   :  { %52 = vmatpush.msra.mxu0 %v25_v26 }
  0x1a   :  { %53 = vmatpush.msra.mxu0 %v24_v27 }
  0x1c   :  { %54 = vmatpush.msra.mxu0 %v23_v28 }
  0x1e   :  { %55 = vmatpush.msra.mxu0 %v22_v29 }
  0x20   :  { %56 = vmatpush.msra.mxu0 %v21_v30 }
  0x21   :  { %57 = vmatmul.f32.vlgmr.msra.gmra.mxu0 %v20_v31 }
  0x9e   :  { %v58_v42 = vpop.f32.mrf.mxu0 }
  0x9f   :  { %v59_v43 = vadd.f32 %v178_v41, %v58_v42 }
  0xa1   :  { %v62_v44 = vmul.f32 0.3, %v59_v43  ;;  %vm61_vm0 = vcmp.ge.f32.partialorder %v59_v43, 0.0 }
  0xa3   :  { %v63_v45 = vsel %vm61_vm0, %v59_v43, %v62_v44 }
  0xa4   :  { %175 = vmatmul.msk.f32.vlgmr.msra.gmra.mxu1 %vm96_vm1, %v63_v45  ;;  %176 = vmatmul.msk.f32.vlgmr.msra.gmra.mxu2 %vm96_vm1, %v63_v45 }
  0xa5   :  { %177 = vmatmul.msk.f32.vlgmr.msra.gmra.mxu3 %vm96_vm1, %v63_v45 }
 0x121   :  { %v117_v50 = vpop.f32.mrf.mxu1 }
 0x122   :  { %v118_v55 = vadd.f32 %v117_v50, %v90_v49 }
 0x127   :  { %v137_v51 = vpop.f32.mrf.mxu2 }
 0x128   :  { %v138_v52 = vadd.f32 %v137_v51, %v91_v47  ;;  %v157_v53 = vpop.f32.mrf.mxu3 }
 0x129   :  { %v158_v54 = vadd.f32 %v157_v53, %v92_v48 }
 0x12a   :  { %v163_v56 = vrot.slane %v138_v52, 6 }
 0x12b   :  { %v164_v57 = vrot.slane %v158_v54, 4 }
 0x12c   :  { %v166_v58 = vsel %vm165_vm2, %v118_v55, %v163_v56 }
 0x12d   :  { %v168_v59 = vsel %vm167_vm3, %v166_v58, %v164_v57 }
 0x12e   :  { %170 = vst [vmem:[%s346_s5] sm:$0x3f] %v168_v59 }

// kernel: weighted_permute_mlp_pallas.11
= control target key start
LH: loop header
LB: loop body
LE: loop exit
PB: predicated region body
PF: predicated region fallthrough
CT: control target
= control target key end

     0   :  { %9 = vsyncpa [#allocation3], 0  ;;  %s1332_s0 = inlined_call_operand.vmem [shape: f32[2,256,128], index: 0, kind: input, shape index: {}]   ;;  %s1333_s1 = inlined_call_operand.vmem [shape: f32[2,256,128], index: 1, kind: input, shape index: {}]   ;;  %s1334_s2 = inlined_call_operand.vmem [shape: f32[2,256,128], index: 2, kind: input, shape index: {}]   ;;  %s1335_s3 = inlined_call_operand.vmem [shape: f32[2,3,128], index: 3, kind: input, shape index: {}]   ;;  %s1336_s4 = inlined_call_operand.hbm [shape: f32[2,256,128], index: 4, kind: output, shape index: {}]  }
   0x1   :  { %11 = vsyncpa [#allocation3 + $0x1], 0  ;;  %s980_s15 = smov 0   ;;  %s982_s16 = smov 0  }
   0x2   :  { %s984_s17 = smov 0   ;;  %s986_s18 = smov 0  }
   0x3   :  { %s988_s19 = smov 0   ;;  %s990_s20 = smov 0  }
   0x4 LB: > { %s786_s21 = sadd.s32 4294967295, %s951_s20   ;;  %s787_s22 = sadd.s32 4294967294, %s951_s20   ;;  %s951_s20 = sphi %s990_s20, %s17_s20   ;;  %s947_s19 = sphi %s988_s19, %s1343_s19   ;;  %s943_s18 = sphi %s986_s18, %s1342_s18   ;;  %s939_s17 = sphi %s984_s17, %s1341_s17   ;;  %s935_s16 = sphi %s982_s16, %s1340_s16   ;;  %s931_s15 = sphi %s980_s15, %s1339_s15  }
   0x5   : > { %s29_s23 = sadd.s32 1, %s947_s19  ;;  %s148_s24 = sadd.s32 1, %s939_s17 }
   0x6   : > { %p31_p0 = scmp.ge.s32.totalorder %s29_s23, 2  ;;  %p158_p1 = scmp.ne.s32.totalorder %s939_s17, %s935_s16 }
   0x7   : > { %p159_p2 = scmp.eq.s32.totalorder %s786_s21, 1  ;;  %p164_p3 = scmp.ne.s32.totalorder %s935_s16, %s931_s15 }
   0x8   : > { %s1345_s23 = smov (%p31_p0, %s29_s23), 0  ;;  %p165_p5 = scmp.eq.s32.totalorder %s787_s22, 1 }
   0x9   : > { %p1020_p4 = por %p159_p2, %p158_p1  ;;  %s143_s26 = ssub.s32 %s947_s19, %s1345_s23 }
   0xa   : > { %p790_p6 = scmp.ge.s32.totalorder %s951_s20, 1  ;;  %p146_p7 = scmp.eq.s32.totalorder %s143_s26, 0 }
   0xb   : > { %p1027_p8 = por %p165_p5, %p164_p3  ;;  %p229_p9 = scmp.lt.s32.totalorder %s951_s20, 3 }
   0xc   : > { %s1033_s28 = scalar_select %p146_p7, %s939_s17, %s148_s24  }
   0xd   : > { %p230_p10 = pnand %p790_p6, %p229_p9 }
   0xe   : > { %p282_p11 = scmp.lt.s32.totalorder (!%p230_p10), %s943_s18, 1  ;;  %s278_s26 = sand.u32 (!%p230_p10), 1, %s935_s16  }
   0xf   : > { %233 = sbr.rel (%p230_p10) target bundleno = 114 (0x72), region = 36  ;;  %s807_s5 = sshll.u32 (!%p230_p10), %s943_s18, 8 }
  0x10   : > { %s642_s10 = scalar_lea.sflag (!%p230_p10), [#allocation3], %s278_s26  ;;  %s893_s21 = scalar_lea.hbm (!%p230_p10), %s1336_s4, 512 }
  0x14   : > { %s283_s29 = scalar_select %p282_p11, %s943_s18, 1 }
  0x16   : > { %s798_s30 = sshll.u32 %s283_s29, 2  ;;  %s804_s8 = sshll.u32 %s283_s29, 8 }
  0x17   : > { %s314_s7 = scalar_lea.vmem %s1335_s3, %s798_s30  ;;  %s1043_s11 = scalar_lea.vmem %s1332_s0, %s804_s8 }
  0x18   : > { %v316_v0 = vld [vmem:[%s314_s7] sm:$0x1]  ;;  %v317_v1 = vld [vmem:[%s314_s7 + $0x1] sm:$0x1]  ;;  %v318_v2 = vld [vmem:[%s314_s7 + $0x2] sm:$0x1]  ;;  %s1048_s14 = scalar_lea.vmem %s1333_s1, %s804_s8  ;;  %s1053_s24 = scalar_lea.vmem %s1334_s2, %s804_s8 }
  0x19   : > { %v319_v3 = vmax.f32 %v316_v0, %v317_v1  ;;  %v347_v26 = vld [vmem:[%s1043_s11] sm:$0xff]  ;;  %v348_v32 = vld [vmem:[%s1043_s11 + $0x8] sm:$0xff]  ;;  %v349_v38 = vld [vmem:[%s1043_s11 + $0x10] sm:$0xff]  ;;  %s1075_s29 = sshll.u32 %s278_s26, 8  ;;  %s655_s7 = scalar_lea.hbm %s1336_s4, %s807_s5 }
  0x1a   : > { %v413_v28 = vld [vmem:[%s1048_s14] sm:$0xff]  ;;  %v414_v33 = vld [vmem:[%s1048_s14 + $0x8] sm:$0xff]  ;;  %v415_v39 = vld [vmem:[%s1048_s14 + $0x10] sm:$0xff]  ;;  %s1109_s30 = scalar_lea.vmem [#allocation2], %s1075_s29  ;;  %s658_s9 = sshll.u32 %s655_s7, 4  ;;  %s659_s9 = int_to_ptr.hbm [resolvable:$true] %s658_s9 }
  0x1b   : > { %v320_v4 = vmax.f32 %v319_v3, %v318_v2  ;;  %v511_v31 = vld [vmem:[%s1053_s24] sm:$0xff]  ;;  %v512_v37 = vld [vmem:[%s1053_s24 + $0x8] sm:$0xff]  ;;  %v513_v40 = vld [vmem:[%s1053_s24 + $0x10] sm:$0xff]  ;;  %s656_s8 = sshll.u32 %s1109_s30, 4  ;;  %s657_s8 = int_to_ptr.vmem [resolvable:$true] %s656_s8 }
  0x1c   : > { %v350_v41 = vld [vmem:[%s1043_s11 + $0x18] sm:$0xff]  ;;  %v351_v48 = vld [vmem:[%s1043_s11 + $0x20] sm:$0xff]  ;;  %v352_v59 = vld [vmem:[%s1043_s11 + $0x28] sm:$0xff] }
  0x1d   : > { %v321_v5 = vsub.f32 %v316_v0, %v320_v4  ;;  %v324_v6 = vsub.f32 %v317_v1, %v320_v4  ;;  %v327_v7 = vsub.f32 %v318_v2, %v320_v4  ;;  %v416_v42 = vld [vmem:[%s1048_s14 + $0x18] sm:$0xff]  ;;  %v417_v53 = vld [vmem:[%s1048_s14 + $0x20] sm:$0xff]  ;;  %v418_v60 = vld [vmem:[%s1048_s14 + $0x28] sm:$0xff] }
  0x1e   : > { %v514_v47 = vld [vmem:[%s1053_s24 + $0x18] sm:$0xff]  ;;  %v515_v54 = vld [vmem:[%s1053_s24 + $0x20] sm:$0xff]  ;;  %v516_v1 = vld [vmem:[%s1053_s24 + $0x28] sm:$0xff] }
  0x1f   : > { %v322_v8 = vmul.f32 1.442695, %v321_v5  ;;  %v325_v9 = vmul.f32 1.442695, %v324_v6  ;;  %v328_v10 = vmul.f32 1.442695, %v327_v7 }
  0x20   : > { %v353_v2 = vld [vmem:[%s1043_s11 + $0x30] sm:$0xff] }
  0x21   : > { %865 = vpow2.f32 %v322_v8  ;;  %v419_v7 = vld [vmem:[%s1048_s14 + $0x30] sm:$0xff] }
  0x22   : > { %867 = vpow2.f32 %v325_v9  ;;  %v517_v8 = vld [vmem:[%s1053_s24 + $0x30] sm:$0xff]  ;;  %v354_v9 = vld [vmem:[%s1043_s11 + $0x38] sm:$0xff] }
  0x23   : > { %869 = vpow2.f32 %v328_v10 }
  0x27   : > { %v866_v11 = vpop.eup %865 }
  0x28   : > { %v868_v12 = vpop.eup %867 }
  0x29   : > { %v870_v13 = vpop.eup %869  ;;  %v330_v14 = vadd.f32 %v868_v12, %v866_v11 }
  0x2b   : > { %v331_v15 = vadd.f32 %v870_v13, %v330_v14  ;;  %v420_v14 = vld [vmem:[%s1048_s14 + $0x38] sm:$0xff] }
  0x2d   : > { %871 = vrcp.f32 %v331_v15  ;;  %v343_v18 = vand.u32 2147483648, %v331_v15  ;;  %vm337_vm0 = vweird.f32 %v331_v15  ;;  %v341_v20 = vand.u32 2147483647, %v331_v15 }
  0x2f   : > { %v344_v22 = vor.u32 1.1754944e-38, %v343_v18  ;;  %vm342_vm3 = vcmp.eq.f32.partialorder %v341_v20, 8.507059e+37 }
  0x33   : > { %v872_v16 = vpop.eup %871 }
  0x34   : > { %v333_v17 = vmul.f32 %v872_v16, %v331_v15  ;;  %vm338_vm1 = vweird.f32 %v872_v16  ;;  %v518_v15 = vld [vmem:[%s1053_s24 + $0x38] sm:$0xff] }
  0x35   : > { %vm339_vm2 = vmor %vm337_vm0, %vm338_vm1 }
  0x36   : > { %v334_v19 = vsub.f32 1.0, %v333_v17 }
  0x38   : > { %v335_v21 = vmul.f32 %v872_v16, %v334_v19 }
  0x3a   : > { %v336_v23 = vadd.f32 %v872_v16, %v335_v21  ;;  %v421_v21 = vld [vmem:[%s1048_s14 + $0x40] sm:$0xff] }
  0x3c   : > { %v340_v24 = vsel %vm339_vm2, %v872_v16, %v336_v23  ;;  %v355_v16 = vld [vmem:[%s1043_s11 + $0x40] sm:$0xff] }
  0x3d   : > { %v345_v25 = vsel %vm342_vm3, %v344_v22, %v340_v24  ;;  %v519_v22 = vld [vmem:[%s1053_s24 + $0x40] sm:$0xff] }
  0x3e   : > { %v379_v27 = vmul.f32 %v866_v11, %v345_v25  ;;  %v445_v29 = vmul.f32 %v868_v12, %v345_v25  ;;  %v543_v30 = vmul.f32 %v870_v13, %v345_v25 }
  0x40   : > { %v1061_v34 = vperm.slane %v379_v27, 0  ;;  %v1063_v35 = vperm.slane %v445_v29, 0  ;;  %v1065_v36 = vperm.slane %v543_v30, 0  ;;  %v356_v27 = vld [vmem:[%s1043_s11 + $0x48] sm:$0xff] }
  0x41   : > { %v520_v29 = vld [vmem:[%s1053_s24 + $0x48] sm:$0xff] }
  0x42   : > { %v381_v43 = vmul.f32 %v1061_v34, %v347_v26  ;;  %v447_v44 = vmul.f32 %v1063_v35, %v413_v28  ;;  %v545_v45 = vmul.f32 %v1065_v36, %v511_v31  ;;  %v382_v46 = vmul.f32 %v1061_v34, %v348_v32  ;;  %v422_v28 = vld [vmem:[%s1048_s14 + $0x48] sm:$0xff] }
  0x43   : > { %v448_v49 = vmul.f32 %v1063_v35, %v414_v33  ;;  %v546_v50 = vmul.f32 %v1065_v36, %v512_v37  ;;  %v383_v51 = vmul.f32 %v1061_v34, %v349_v38  ;;  %v449_v52 = vmul.f32 %v1063_v35, %v415_v39  ;;  %v357_v37 = vld [vmem:[%s1043_s11 + $0x50] sm:$0xff] }
  0x44   : > { %v479_v55 = vadd.f32 %v447_v44, %v381_v43  ;;  %v547_v56 = vmul.f32 %v1065_v36, %v513_v40  ;;  %v384_v57 = vmul.f32 %v1061_v34, %v350_v41  ;;  %v450_v58 = vmul.f32 %v1063_v35, %v416_v42  ;;  %v423_v38 = vld [vmem:[%s1048_s14 + $0x50] sm:$0xff]  ;;  %v358_v44 = vld [vmem:[%s1043_s11 + $0x58] sm:$0xff] }
  0x45   : > { %v480_v61 = vadd.f32 %v448_v49, %v382_v46  ;;  %v481_v62 = vadd.f32 %v449_v52, %v383_v51  ;;  %v548_v63 = vmul.f32 %v1065_v36, %v514_v47  ;;  %v385_v0 = vmul.f32 %v1061_v34, %v351_v48  ;;  %v521_v43 = vld [vmem:[%s1053_s24 + $0x50] sm:$0xff]  ;;  %v424_v49 = vld [vmem:[%s1048_s14 + $0x58] sm:$0xff] }
  0x46   : > { %v577_v3 = vadd.f32 %v545_v45, %v479_v55  ;;  %v482_v4 = vadd.f32 %v450_v58, %v384_v57  ;;  %v451_v5 = vmul.f32 %v1063_v35, %v417_v53  ;;  %v549_v6 = vmul.f32 %v1065_v36, %v515_v54  ;;  %v359_v55 = vld [vmem:[%s1043_s11 + $0x60] sm:$0xff] }
  0x47   : > { %v578_v10 = vadd.f32 %v546_v50, %v480_v61  ;;  %v579_v11 = vadd.f32 %v547_v56, %v481_v62  ;;  %v386_v12 = vmul.f32 %v1061_v34, %v352_v59  ;;  %v452_v13 = vmul.f32 %v1063_v35, %v418_v60  ;;  %v522_v50 = vld [vmem:[%s1053_s24 + $0x58] sm:$0xff]  ;;  %v425_v56 = vld [vmem:[%s1048_s14 + $0x60] sm:$0xff]  ;;  %v360_v62 = vld [vmem:[%s1043_s11 + $0x68] sm:$0xff] }
  0x48   : > { %609 = vst [vmem:[%s1109_s30] sm:$0xff] %v577_v3  ;;  %v580_v17 = vadd.f32 %v548_v63, %v482_v4  ;;  %v483_v18 = vadd.f32 %v451_v5, %v385_v0  ;;  %v550_v19 = vmul.f32 %v1065_v36, %v516_v1  ;;  %v387_v20 = vmul.f32 %v1061_v34, %v353_v2  ;;  %v523_v57 = vld [vmem:[%s1053_s24 + $0x60] sm:$0xff]  ;;  %v426_v63 = vld [vmem:[%s1048_s14 + $0x68] sm:$0xff]  ;;  %v361_v5 = vld [vmem:[%s1043_s11 + $0x70] sm:$0xff] }
  0x49   : > { %610 = vst [vmem:[%s1109_s30 + $0x8] sm:$0xff] %v578_v10  ;;  %v484_v23 = vadd.f32 %v452_v13, %v386_v12  ;;  %v453_v24 = vmul.f32 %v1063_v35, %v419_v7  ;;  %v551_v25 = vmul.f32 %v1065_v36, %v517_v8  ;;  %v388_v26 = vmul.f32 %v1061_v34, %v354_v9  ;;  %v524_v4 = vld [vmem:[%s1053_s24 + $0x68] sm:$0xff]  ;;  %v362_v12 = vld [vmem:[%s1043_s11 + $0x78] sm:$0xff] }
  0x4a   : > { %611 = vst [vmem:[%s1109_s30 + $0x10] sm:$0xff] %v579_v11  ;;  %v581_v30 = vadd.f32 %v549_v6, %v483_v18  ;;  %v454_v31 = vmul.f32 %v1063_v35, %v420_v14  ;;  %v552_v32 = vmul.f32 %v1065_v36, %v518_v15  ;;  %v389_v33 = vmul.f32 %v1061_v34, %v355_v16  ;;  %v427_v6 = vld [vmem:[%s1048_s14 + $0x70] sm:$0xff]  ;;  %v526_v18 = vld [vmem:[%s1053_s24 + $0x78] sm:$0xff] }
  0x4b   : > { %612 = vst [vmem:[%s1109_s30 + $0x18] sm:$0xff] %v580_v17  ;;  %v582_v39 = vadd.f32 %v550_v19, %v484_v23  ;;  %v485_v40 = vadd.f32 %v453_v24, %v387_v20  ;;  %v455_v41 = vmul.f32 %v1063_v35, %v421_v21  ;;  %v553_v42 = vmul.f32 %v1065_v36, %v519_v22  ;;  %v525_v11 = vld [vmem:[%s1053_s24 + $0x70] sm:$0xff]  ;;  %v428_v17 = vld [vmem:[%s1048_s14 + $0x78] sm:$0xff]  ;;  %v363_v23 = vld [vmem:[%s1043_s11 + $0x80] sm:$0xff] }
  0x4c   : > { %613 = vst [vmem:[%s1109_s30 + $0x20] sm:$0xff] %v581_v30  ;;  %v486_v45 = vadd.f32 %v454_v31, %v388_v26  ;;  %v390_v46 = vmul.f32 %v1061_v34, %v356_v27  ;;  %v456_v47 = vmul.f32 %v1063_v35, %v422_v28  ;;  %v554_v48 = vmul.f32 %v1065_v36, %v520_v29  ;;  %v429_v24 = vld [vmem:[%s1048_s14 + $0x80] sm:$0xff]  ;;  %v364_v30 = vld [vmem:[%s1043_s11 + $0x88] sm:$0xff] }
  0x4d   : > { %614 = vst [vmem:[%s1109_s30 + $0x28] sm:$0xff] %v582_v39  ;;  %v583_v51 = vadd.f32 %v551_v25, %v485_v40  ;;  %v487_v52 = vadd.f32 %v455_v41, %v389_v33  ;;  %v391_v53 = vmul.f32 %v1061_v34, %v357_v37  ;;  %v457_v54 = vmul.f32 %v1063_v35, %v423_v38  ;;  %v527_v25 = vld [vmem:[%s1053_s24 + $0x80] sm:$0xff]  ;;  %v430_v31 = vld [vmem:[%s1048_s14 + $0x88] sm:$0xff]  ;;  %v365_v40 = vld [vmem:[%s1043_s11 + $0x90] sm:$0xff] }
  0x4e   : > { %v584_v58 = vadd.f32 %v552_v32, %v486_v45  ;;  %v488_v59 = vadd.f32 %v456_v47, %v390_v46  ;;  %v555_v60 = vmul.f32 %v1065_v36, %v521_v43  ;;  %v392_v61 = vmul.f32 %v1061_v34, %v358_v44  ;;  %v528_v39 = vld [vmem:[%s1053_s24 + $0x88] sm:$0xff]  ;;  %v431_v41 = vld [vmem:[%s1048_s14 + $0x90] sm:$0xff]  ;;  %v366_v47 = vld [vmem:[%s1043_s11 + $0x98] sm:$0xff] }
  0x4f   : > { %615 = vst [vmem:[%s1109_s30 + $0x30] sm:$0xff] %v583_v51  ;;  %v585_v0 = vadd.f32 %v553_v42, %v487_v52  ;;  %v489_v1 = vadd.f32 %v457_v54, %v391_v53  ;;  %v458_v2 = vmul.f32 %v1063_v35, %v424_v49  ;;  %v556_v3 = vmul.f32 %v1065_v36, %v522_v50  ;;  %v529_v46 = vld [vmem:[%s1053_s24 + $0x90] sm:$0xff]  ;;  %v432_v52 = vld [vmem:[%s1048_s14 + $0x98] sm:$0xff] }
  0x50   : > { %616 = vst [vmem:[%s1109_s30 + $0x38] sm:$0xff] %v584_v58  ;;  %v586_v7 = vadd.f32 %v554_v48, %v488_v59  ;;  %v393_v8 = vmul.f32 %v1061_v34, %v359_v55  ;;  %v459_v9 = vmul.f32 %v1063_v35, %v425_v56  ;;  %v557_v10 = vmul.f32 %v1065_v36, %v523_v57  ;;  %v530_v53 = vld [vmem:[%s1053_s24 + $0x98] sm:$0xff]  ;;  %v367_v58 = vld [vmem:[%s1043_s11 + $0xa0] sm:$0xff] }
  0x51   : > { %617 = vst [vmem:[%s1109_s30 + $0x40] sm:$0xff] %v585_v0  ;;  %v587_v13 = vadd.f32 %v555_v60, %v489_v1  ;;  %v490_v14 = vadd.f32 %v458_v2, %v392_v61  ;;  %v394_v15 = vmul.f32 %v1061_v34, %v360_v62  ;;  %v460_v16 = vmul.f32 %v1063_v35, %v426_v63  ;;  %v433_v59 = vld [vmem:[%s1048_s14 + $0xa0] sm:$0xff]  ;;  %v368_v1 = vld [vmem:[%s1043_s11 + $0xa8] sm:$0xff] }
  0x52   : > { %618 = vst [vmem:[%s1109_s30 + $0x48] sm:$0xff] %v586_v7  ;;  %v491_v19 = vadd.f32 %v459_v9, %v393_v8  ;;  %v558_v20 = vmul.f32 %v1065_v36, %v524_v4  ;;  %v395_v21 = vmul.f32 %v1061_v34, %v361_v5  ;;  %v461_v22 = vmul.f32 %v1063_v35, %v427_v6  ;;  %v531_v60 = vld [vmem:[%s1053_s24 + $0xa0] sm:$0xff]  ;;  %v434_v2 = vld [vmem:[%s1048_s14 + $0xa8] sm:$0xff]  ;;  %v369_v8 = vld [vmem:[%s1043_s11 + $0xb0] sm:$0xff] }
  0x53   : > { %619 = vst [vmem:[%s1109_s30 + $0x50] sm:$0xff] %v587_v13  ;;  %v588_v26 = vadd.f32 %v556_v3, %v490_v14  ;;  %v492_v27 = vadd.f32 %v460_v16, %v394_v15  ;;  %v559_v28 = vmul.f32 %v1065_v36, %v525_v11  ;;  %v396_v29 = vmul.f32 %v1061_v34, %v362_v12  ;;  %v532_v7 = vld [vmem:[%s1053_s24 + $0xa8] sm:$0xff]  ;;  %v435_v9 = vld [vmem:[%s1048_s14 + $0xb0] sm:$0xff]  ;;  %v370_v15 = vld [vmem:[%s1043_s11 + $0xb8] sm:$0xff] }
  0x54   : > { %v589_v32 = vadd.f32 %v557_v10, %v491_v19  ;;  %v493_v33 = vadd.f32 %v461_v22, %v395_v21  ;;  %v462_v37 = vmul.f32 %v1063_v35, %v428_v17  ;;  %v560_v38 = vmul.f32 %v1065_v36, %v526_v18  ;;  %v533_v14 = vld [vmem:[%s1053_s24 + $0xb0] sm:$0xff]  ;;  %v534_v21 = vld [vmem:[%s1053_s24 + $0xb8] sm:$0xff] }
  0x55   : > { %620 = vst [vmem:[%s1109_s30 + $0x58] sm:$0xff] %v588_v26  ;;  %v590_v42 = vadd.f32 %v558_v20, %v492_v27  ;;  %v397_v43 = vmul.f32 %v1061_v34, %v363_v23  ;;  %v463_v44 = vmul.f32 %v1063_v35, %v429_v24  ;;  %v561_v45 = vmul.f32 %v1065_v36, %v527_v25  ;;  %v436_v20 = vld [vmem:[%s1048_s14 + $0xb8] sm:$0xff]  ;;  %v371_v26 = vld [vmem:[%s1043_s11 + $0xc0] sm:$0xff] }
  0x56   : > { %621 = vst [vmem:[%s1109_s30 + $0x60] sm:$0xff] %v589_v32  ;;  %v591_v48 = vadd.f32 %v559_v28, %v493_v33  ;;  %v494_v49 = vadd.f32 %v462_v37, %v396_v29  ;;  %v398_v50 = vmul.f32 %v1061_v34, %v364_v30  ;;  %v464_v51 = vmul.f32 %v1063_v35, %v430_v31  ;;  %v437_v27 = vld [vmem:[%s1048_s14 + $0xc0] sm:$0xff]  ;;  %v372_v33 = vld [vmem:[%s1043_s11 + $0xc8] sm:$0xff] }
  0x57   : > { %622 = vst [vmem:[%s1109_s30 + $0x68] sm:$0xff] %v590_v42  ;;  %v495_v54 = vadd.f32 %v463_v44, %v397_v43  ;;  %v562_v55 = vmul.f32 %v1065_v36, %v528_v39  ;;  %v399_v56 = vmul.f32 %v1061_v34, %v365_v40  ;;  %v465_v57 = vmul.f32 %v1063_v35, %v431_v41  ;;  %v535_v28 = vld [vmem:[%s1053_s24 + $0xc0] sm:$0xff]  ;;  %v438_v37 = vld [vmem:[%s1048_s14 + $0xc8] sm:$0xff]  ;;  %v373_v43 = vld [vmem:[%s1043_s11 + $0xd0] sm:$0xff] }
  0x58   : > { %623 = vst [vmem:[%s1109_s30 + $0x70] sm:$0xff] %v591_v48  ;;  %v592_v61 = vadd.f32 %v560_v38, %v494_v49  ;;  %v496_v62 = vadd.f32 %v464_v51, %v398_v50  ;;  %v563_v63 = vmul.f32 %v1065_v36, %v529_v46  ;;  %v400_v0 = vmul.f32 %v1061_v34, %v366_v47  ;;  %v536_v42 = vld [vmem:[%s1053_s24 + $0xc8] sm:$0xff]  ;;  %v439_v44 = vld [vmem:[%s1048_s14 + $0xd0] sm:$0xff]  ;;  %v374_v50 = vld [vmem:[%s1043_s11 + $0xd8] sm:$0xff] }
  0x59   : > { %v593_v3 = vadd.f32 %v561_v45, %v495_v54  ;;  %v497_v4 = vadd.f32 %v465_v57, %v399_v56  ;;  %v466_v5 = vmul.f32 %v1063_v35, %v432_v52  ;;  %v564_v6 = vmul.f32 %v1065_v36, %v530_v53  ;;  %v537_v49 = vld [vmem:[%s1053_s24 + $0xd0] sm:$0xff]  ;;  %v538_v56 = vld [vmem:[%s1053_s24 + $0xd8] sm:$0xff] }
  0x5a   : > { %624 = vst [vmem:[%s1109_s30 + $0x78] sm:$0xff] %v592_v61  ;;  %v594_v10 = vadd.f32 %v562_v55, %v496_v62  ;;  %v401_v11 = vmul.f32 %v1061_v34, %v367_v58  ;;  %v467_v12 = vmul.f32 %v1063_v35, %v433_v59  ;;  %v565_v13 = vmul.f32 %v1065_v36, %v531_v60  ;;  %v440_v55 = vld [vmem:[%s1048_s14 + $0xd8] sm:$0xff]  ;;  %v375_v61 = vld [vmem:[%s1043_s11 + $0xe0] sm:$0xff] }
  0x5b   : > { %625 = vst [vmem:[%s1109_s30 + $0x80] sm:$0xff] %v593_v3  ;;  %v595_v16 = vadd.f32 %v563_v63, %v497_v4  ;;  %v498_v17 = vadd.f32 %v466_v5, %v400_v0  ;;  %v402_v18 = vmul.f32 %v1061_v34, %v368_v1  ;;  %v468_v19 = vmul.f32 %v1063_v35, %v434_v2  ;;  %v441_v62 = vld [vmem:[%s1048_s14 + $0xe0] sm:$0xff]  ;;  %v376_v4 = vld [vmem:[%s1043_s11 + $0xe8] sm:$0xff] }
  0x5c   : > { %626 = vst [vmem:[%s1109_s30 + $0x88] sm:$0xff] %v594_v10  ;;  %v499_v22 = vadd.f32 %v467_v12, %v401_v11  ;;  %v566_v23 = vmul.f32 %v1065_v36, %v532_v7  ;;  %v403_v24 = vmul.f32 %v1061_v34, %v369_v8  ;;  %v469_v25 = vmul.f32 %v1063_v35, %v435_v9  ;;  %v539_v63 = vld [vmem:[%s1053_s24 + $0xe0] sm:$0xff]  ;;  %v442_v5 = vld [vmem:[%s1048_s14 + $0xe8] sm:$0xff]  ;;  %v377_v11 = vld [vmem:[%s1043_s11 + $0xf0] sm:$0xff] }
  0x5d   : > { %627 = vst [vmem:[%s1109_s30 + $0x90] sm:$0xff] %v595_v16  ;;  %v596_v29 = vadd.f32 %v564_v6, %v498_v17  ;;  %v500_v30 = vadd.f32 %v468_v19, %v402_v18  ;;  %v567_v31 = vmul.f32 %v1065_v36, %v533_v14  ;;  %v404_v32 = vmul.f32 %v1061_v34, %v370_v15  ;;  %v540_v10 = vld [vmem:[%s1053_s24 + $0xe8] sm:$0xff]  ;;  %v443_v12 = vld [vmem:[%s1048_s14 + $0xf0] sm:$0xff]  ;;  %v378_v18 = vld [vmem:[%s1043_s11 + $0xf8] sm:$0xff]  ;;  %s887_s11 = sshra.s32 %s659_s9, 4  ;;  %s888_s11 = int_to_ptr.hbm [resolvable:$true] %s887_s11 }
  0x5e   : > { %v597_v38 = vadd.f32 %v565_v13, %v499_v22  ;;  %v501_v39 = vadd.f32 %v469_v25, %v403_v24  ;;  %v470_v40 = vmul.f32 %v1063_v35, %v436_v20  ;;  %v568_v41 = vmul.f32 %v1065_v36, %v534_v21  ;;  %v541_v17 = vld [vmem:[%s1053_s24 + $0xf0] sm:$0xff]  ;;  %v542_v24 = vld [vmem:[%s1053_s24 + $0xf8] sm:$0xff]  ;;  %s889_s12 = scalar_lea.hbm %s888_s11, 256  ;;  %p894_p1 = scmp.lt.s32.totalorder %s888_s11, %s1336_s4 }
  0x5f   : > { %628 = vst [vmem:[%s1109_s30 + $0x98] sm:$0xff] %v596_v29  ;;  %v598_v45 = vadd.f32 %v566_v23, %v500_v30  ;;  %v405_v46 = vmul.f32 %v1061_v34, %v371_v26  ;;  %v471_v47 = vmul.f32 %v1063_v35, %v437_v27  ;;  %v569_v48 = vmul.f32 %v1065_v36, %v535_v28  ;;  %v444_v23 = vld [vmem:[%s1048_s14 + $0xf8] sm:$0xff]  ;;  %p890_p12 = scmp.ne.s32.totalorder %s888_s11, %s889_s12  ;;  %p895_p2 = scmp.lt.s32.totalorder %s893_s21, %s889_s12 }
  0x60   : > { %629 = vst [vmem:[%s1109_s30 + $0xa0] sm:$0xff] %v597_v38  ;;  %v599_v51 = vadd.f32 %v567_v31, %v501_v39  ;;  %v502_v52 = vadd.f32 %v470_v40, %v404_v32  ;;  %v406_v53 = vmul.f32 %v1061_v34, %v372_v33  ;;  %v472_v54 = vmul.f32 %v1063_v35, %v438_v37 }
  0x61   : > { %630 = vst [vmem:[%s1109_s30 + $0xa8] sm:$0xff] %v598_v45  ;;  %v503_v57 = vadd.f32 %v471_v47, %v405_v46  ;;  %v570_v58 = vmul.f32 %v1065_v36, %v536_v42  ;;  %v407_v59 = vmul.f32 %v1061_v34, %v373_v43  ;;  %v473_v60 = vmul.f32 %v1063_v35, %v439_v44  ;;  %p891_p13 = pnand %p890_p12, %p1020_p4  ;;  %p896_p3 = por %p895_p2, %p894_p1 }
  0x62   : > { %631 = vst [vmem:[%s1109_s30 + $0xb0] sm:$0xff] %v599_v51  ;;  %v600_v0 = vadd.f32 %v568_v41, %v502_v52  ;;  %v504_v1 = vadd.f32 %v472_v54, %v406_v53  ;;  %v571_v2 = vmul.f32 %v1065_v36, %v537_v49  ;;  %v408_v3 = vmul.f32 %v1061_v34, %v374_v50 }
  0x63   : > { %v601_v6 = vadd.f32 %v569_v48, %v503_v57  ;;  %v505_v7 = vadd.f32 %v473_v60, %v407_v59  ;;  %v474_v8 = vmul.f32 %v1063_v35, %v440_v55  ;;  %v572_v9 = vmul.f32 %v1065_v36, %v538_v56  ;;  %p892_p0 = pneg %p891_p13 }
  0x64   : > { %632 = vst [vmem:[%s1109_s30 + $0xb8] sm:$0xff] %v600_v0  ;;  %v602_v13 = vadd.f32 %v570_v58, %v504_v1  ;;  %v409_v14 = vmul.f32 %v1061_v34, %v375_v61  ;;  %v475_v15 = vmul.f32 %v1063_v35, %v441_v62  ;;  %v573_v16 = vmul.f32 %v1065_v36, %v539_v63 }
  0x65   : > { %633 = vst [vmem:[%s1109_s30 + $0xc0] sm:$0xff] %v601_v6  ;;  %v603_v19 = vadd.f32 %v571_v2, %v505_v7  ;;  %v506_v20 = vadd.f32 %v474_v8, %v408_v3  ;;  %v410_v21 = vmul.f32 %v1061_v34, %v376_v4  ;;  %v476_v22 = vmul.f32 %v1063_v35, %v442_v5  ;;  %p897_p5 = pnand %p896_p3, %p892_p0 }
  0x66   : > { %634 = vst [vmem:[%s1109_s30 + $0xc8] sm:$0xff] %v602_v13  ;;  %v507_v25 = vadd.f32 %v475_v15, %v409_v14  ;;  %v574_v26 = vmul.f32 %v1065_v36, %v540_v10  ;;  %v411_v27 = vmul.f32 %v1061_v34, %v377_v11  ;;  %v477_v28 = vmul.f32 %v1063_v35, %v443_v12 }
  0x67   : > { %635 = vst [vmem:[%s1109_s30 + $0xd0] sm:$0xff] %v603_v19  ;;  %v604_v29 = vadd.f32 %v572_v9, %v506_v20  ;;  %v508_v30 = vadd.f32 %v476_v22, %v410_v21  ;;  %v575_v31 = vmul.f32 %v1065_v36, %v541_v17  ;;  %v412_v32 = vmul.f32 %v1061_v34, %v378_v18 }
  0x68   : > { %v605_v33 = vadd.f32 %v573_v16, %v507_v25  ;;  %v509_v37 = vadd.f32 %v477_v28, %v411_v27  ;;  %v478_v38 = vmul.f32 %v1063_v35, %v444_v23  ;;  %v576_v39 = vmul.f32 %v1065_v36, %v542_v24 }
  0x69   : > { %636 = vst [vmem:[%s1109_s30 + $0xd8] sm:$0xff] %v604_v29  ;;  %v606_v40 = vadd.f32 %v574_v26, %v508_v30 }
  0x6a   : > { %637 = vst [vmem:[%s1109_s30 + $0xe0] sm:$0xff] %v605_v33  ;;  %v607_v41 = vadd.f32 %v575_v31, %v509_v37  ;;  %v510_v42 = vadd.f32 %v478_v38, %v412_v32 }
  0x6b   : > { %638 = vst [vmem:[%s1109_s30 + $0xe8] sm:$0xff] %v606_v40 }
  0x6c   : > { %639 = vst [vmem:[%s1109_s30 + $0xf0] sm:$0xff] %v607_v41  ;;  %v608_v34 = vadd.f32 %v576_v39, %v510_v42 }
  0x6e   : > { %640 = vst [vmem:[%s1109_s30 + $0xf8] sm:$0xff] %v608_v34 }
  0x6f   : > { %900 = shalt.err (!%p897_p5)
}
  0x70   : > { %s953_s26 = smov 128   ;;  %s954_s29 = smov 8  }
  0x71   : > { %808 = dma.vmem_to_hbm [thread:$0]  (%p1020_p4), %s657_s8, 4096, %s659_s9, %s642_s10, %s953_s26, %s953_s26, %s954_s29  }
  0x72 PF: > { %p814_p6 = scmp.ge.s32.totalorder %s951_s20, 2  ;;  %s673_s30 = sand.u32 1, %s931_s15  }
  0x73   : > { %s674_s5 = scalar_lea.sflag [#allocation3], %s673_s30 }
  0x74   : > { %p811_p7 = pnand %p814_p6, %p1027_p8 }
  0x76   : > { %p812_p9 = pneg %p811_p7 }
  0x78   : > { %926 = dma.done.wait (%p812_p9), %s674_s5, 4096  }
  0x79   : > { %928 = vsyncadd (%p812_p9), %s674_s5, 4294963200  ;;  %s17_s20 = sadd.s32 1, %s951_s20   ;;  %s1339_s15 = smov %s935_s16 }
  0x7a   : > { %p14_p10 = scmp.ge.s32.totalorder %s17_s20, 4   ;;  %s1340_s16 = smov %s939_s17 }
  0x7b   : > { %s1341_s17 = smov %s1033_s28  ;;  %s1342_s18 = smov %s947_s19 }
  0x7c   : > { %s1343_s19 = smov %s1345_s23  ;;  %16 = sbr.rel (!%p14_p10) target bundleno = 4 (0x4), region = 80 }
  0x81   :  { %680 = vsyncpa [#allocation3], 1 }
  0x82   :  { %682 = vsyncpa [#allocation3 + $0x1], 1 }

</bundles_post_ra>
